<compile_context>
chip_gen: v7x
topology: tpu7x:2x2x1
jax: 0.10.0
libtpu: 0.0.40
codegen_flags: <defaults>
</compile_context>

<pallas_src>
import math

import jax
import jax.numpy as jnp
from jax import lax
from jax.experimental import pallas as pl
from jax.experimental.pallas import tpu as pltpu

# ----------------------------- model dims -----------------------------------
FRAME     = 320          # samples per wav2vec2 output frame
HIDDEN    = 64           # d_model (synthetic HIDDEN_SIZE)
HEADS     = 8            # n_transformer_enc_heads
HEAD_DIM  = HIDDEN // HEADS
DFF       = 256          # transformer feed-forward width
VOCAB_CTC = 16           # synthetic wav2vec CTC vocab
SEG_VOCAB = 1            # SegmentationFrameClassifier vocab_size
EPS       = 1e-5


def _gelu(x):
    # TODO(synk): PyTorch uses exact erf-GELU; tanh approximation used here
    #             (erf is not reliably lowerable in Mosaic).
    return 0.5 * x * (1.0 + jnp.tanh(0.7978845608028654 * (x + 0.044715 * x * x * x)))


def _layernorm(x, g, b):
    mean = jnp.mean(x, axis=-1, keepdims=True)
    var = jnp.mean((x - mean) ** 2, axis=-1, keepdims=True)
    return (x - mean) * lax.rsqrt(var + EPS) * g + b


# ------------------------------- kernel --------------------------------------
def shas_kernel(frames_ref, mask_ref,
                w_feat, b_feat, w_lm, b_lm,
                ln1_g, ln1_b, w_qk, b_qk, w_vo, b_vo, bo,
                ln2_g, ln2_b, w1, b1, w2, b2,
                lnf_g, lnf_b, w_out, b_out,
                ctc_ref, seg_ref):
    Bb, T, F = frames_ref.shape
    R = Bb * T
    bf16 = jnp.bfloat16

    # -------- synthetic wav2vec: feature projection + CTC head (bf16 MXU) ----
    x = frames_ref[...].reshape(R, F).astype(bf16)                    # (R, 320)
    h = _gelu(jnp.dot(x, w_feat[...],
                      preferred_element_type=jnp.float32) + b_feat[...])  # (R, D) f32
    ctc = jnp.dot(h.astype(bf16), w_lm[...],
                  preferred_element_type=jnp.float32) + b_lm[...]     # (R, 16) f32
    ctc_ref[...] = ctc.reshape(Bb, T, VOCAB_CTC).astype(ctc_ref.dtype)

    # key padding bias: PyTorch passes ~out_mask.bool(); padded keys get -1e9.
    neg = jnp.where(mask_ref[...][:, 0, :] > 0.0, 0.0, -1e9)          # (Bb, T)

    # -------- SegmentationFrameClassifier (eval mode, dropout = id) ----------
    # --- pre-norm self attention block ---
    xn = _layernorm(h, ln1_g[...], ln1_b[...])                        # (R, D) f32
    xn16 = xn.astype(bf16)
    # fused Q/K projection (softmax scale folded into W_q / b_q in wrapper)
    qk = jnp.dot(xn16, w_qk[...], preferred_element_type=jnp.float32) + b_qk[...]
    qk16 = qk.astype(bf16)                                            # (R, 2D)
    # V projection with per-head output weights folded in (W_vo[h] = Wv_h @ Wo_h)
    vp = jnp.dot(xn16, w_vo[...], preferred_element_type=jnp.float32) + b_vo[...]
    vp16 = vp.astype(bf16)                                            # (R, H*D)

    attn_rows = []
    # TODO(synk): for large Bb (tiny-T inputs on v6e) switch this static unroll
    #             to lax.fori_loop to bound live ranges and compile time.
    for b in range(Bb):                                  # static unroll (small Bb)
        r0 = b * T
        qk_b = qk16[r0:r0 + T, :]                        # (T, 2D) bf16
        vp_b = vp16[r0:r0 + T, :]                        # (T, H*D) bf16
        negb = jnp.broadcast_to(neg[b:b + 1, :], (T, T))  # hoisted, reused by heads
        acc = jnp.zeros((T, HIDDEN), jnp.float32)
        for hh in range(HEADS):                          # static unroll over heads
            c0 = hh * HEAD_DIM
            qh = qk_b[:, c0:c0 + HEAD_DIM]                            # (T, hd) bf16
            kh = qk_b[:, HIDDEN + c0:HIDDEN + c0 + HEAD_DIM]          # (T, hd) bf16
            vh = vp_b[:, hh * HIDDEN:(hh + 1) * HIDDEN]               # (T, D)  bf16
            # TODO(synk): whole-sequence (T, T) scores; replace with a KV-tiled
            #             online-softmax loop for long audio (T >~ 1k) / v7x VMEM,
            #             and add a second "parallel" grid axis over query tiles.
            s = lax.dot_general(qh, kh, (((1,), (1,)), ((), ())),
                                preferred_element_type=jnp.float32) + negb
            p = jnp.exp(s - jnp.max(s, axis=-1, keepdims=True))       # unnormalized
            l = jnp.sum(p, axis=-1, keepdims=True)
            pv = jnp.dot(p.astype(bf16), vh,
                         preferred_element_type=jnp.float32)          # (T, D)
            # deferred softmax normalization: scale the (T, D) result, not (T, T)
            acc = acc + pv * pl.reciprocal(l, approx=True)
        attn_rows.append(acc)
    attn = attn_rows[0] if Bb == 1 else jnp.concatenate(attn_rows, axis=0)

    h1 = h + attn + bo[...]                              # residual + out-proj bias

    # --- pre-norm feed-forward block ---
    xn2 = _layernorm(h1, ln2_g[...], ln2_b[...])
    ff = _gelu(jnp.dot(xn2.astype(bf16), w1[...],
                       preferred_element_type=jnp.float32) + b1[...])
    ff = jnp.dot(ff.astype(bf16), w2[...],
                 preferred_element_type=jnp.float32) + b2[...]
    h2 = h1 + ff

    # --- final LayerNorm + Linear(d_model, 1) as a lane reduction ---
    # (keeps T on the lane axis of the seg output -> dense stores)
    y = _layernorm(h2, lnf_g[...], lnf_b[...])                        # (R, D)
    y3 = y.reshape(Bb, T, HIDDEN)
    seg = jnp.sum(y3 * w_out[...][None, :, :], axis=-1) + b_out[...]  # (Bb, T)
    seg_ref[...] = seg.reshape(Bb, 1, T).astype(seg_ref.dtype)


# ------------------------------ parameters ------------------------------------
def init_params(key):
    def dense(k, shape, scale=0.02):
        return scale * jax.random.normal(k, shape, dtype=jnp.float32)

    keys = jax.random.split(key, 12)
    return {
        "w_feat": dense(keys[0], (FRAME, HIDDEN)),
        "b_feat": jnp.zeros((1, HIDDEN), jnp.float32),
        "w_lm":   dense(keys[1], (HIDDEN, VOCAB_CTC)),
        "b_lm":   jnp.zeros((1, VOCAB_CTC), jnp.float32),
        "ln1_g":  jnp.ones((1, HIDDEN), jnp.float32),
        "ln1_b":  jnp.zeros((1, HIDDEN), jnp.float32),
        "wq": dense(keys[2], (HIDDEN, HIDDEN)), "bq": jnp.zeros((1, HIDDEN), jnp.float32),
        "wk": dense(keys[3], (HIDDEN, HIDDEN)), "bk": jnp.zeros((1, HIDDEN), jnp.float32),
        "wv": dense(keys[4], (HIDDEN, HIDDEN)), "bv": jnp.zeros((1, HIDDEN), jnp.float32),
        "wo": dense(keys[5], (HIDDEN, HIDDEN)), "bo": jnp.zeros((1, HIDDEN), jnp.float32),
        "ln2_g":  jnp.ones((1, HIDDEN), jnp.float32),
        "ln2_b":  jnp.zeros((1, HIDDEN), jnp.float32),
        "w1": dense(keys[6], (HIDDEN, DFF)),    "b1": jnp.zeros((1, DFF), jnp.float32),
        "w2": dense(keys[7], (DFF, HIDDEN)),    "b2": jnp.zeros((1, HIDDEN), jnp.float32),
        "lnf_g":  jnp.ones((1, HIDDEN), jnp.float32),
        "lnf_b":  jnp.zeros((1, HIDDEN), jnp.float32),
        "w_out": dense(keys[8], (HIDDEN, SEG_VOCAB)),
        "b_out": jnp.zeros((1, SEG_VOCAB), jnp.float32),
    }


def _prepare_weights(params):
    """Fuse / fold / cast weights for the kernel (runs under jit, tiny)."""
    bf16 = jnp.bfloat16
    scale = 1.0 / math.sqrt(HEAD_DIM)
    # fused Q/K projection, softmax scale folded into the Q half
    w_qk = jnp.concatenate([params["wq"] * scale, params["wk"]], axis=1).astype(bf16)
    b_qk = jnp.concatenate([params["bq"] * scale, params["bk"]], axis=1)        # (1, 128)
    # fold per-head output projection into V:  W_vo[:, h*64:(h+1)*64] = Wv_h @ Wo_h
    wv_r = params["wv"].reshape(HIDDEN, HEADS, HEAD_DIM)
    wo_r = params["wo"].reshape(HEADS, HEAD_DIM, HIDDEN)
    w_vo = jnp.einsum("dhk,hko->dho", wv_r, wo_r).reshape(
        HIDDEN, HEADS * HIDDEN).astype(bf16)                                    # (64, 512)
    b_vo = jnp.einsum("hk,hko->ho", params["bv"].reshape(HEADS, HEAD_DIM),
                      wo_r).reshape(1, HEADS * HIDDEN)                          # (1, 512)

    return [
        params["w_feat"].astype(bf16), params["b_feat"],
        params["w_lm"].astype(bf16), params["b_lm"],
        params["ln1_g"], params["ln1_b"],
        w_qk, b_qk, w_vo, b_vo, params["bo"],
        params["ln2_g"], params["ln2_b"],
        params["w1"].astype(bf16), params["b1"],
        params["w2"].astype(bf16), params["b2"],
        params["lnf_g"], params["lnf_b"],
        params["w_out"].reshape(1, HIDDEN), params["b_out"].reshape(1, 1),
    ]


def _pick_bb(B, T, cap=4, target_rows=256):
    """Batch elements per grid step.

    Aims for ~target_rows rows per step (amortize the ~0.35us/step pipeline
    overhead), but keeps the grid >= 2 whenever B >= 2 (both v7x TensorCores
    get work) and caps the static per-step unroll.
    """
    bb = min(cap, max(1, target_rows // max(T, 1)), B)
    if B > 1:
        bb = min(bb, B // 2)
    bb = max(bb, 1)
    while B % bb:
        bb -= 1
    return bb


# ------------------------------- wrapper --------------------------------------
@jax.jit
def shas_forward(audio, in_mask, out_mask, params):
    """SHASWithSSL.forward(audio, in_mask, out_mask) -> (target_ctc, output).

    audio: (B, L) float32, in_mask: (B, L), out_mask: (B, T) with T = L // FRAME.
    Returns target_ctc (B, T, VOCAB_CTC) and output (B, T).
    """
    del in_mask  # TODO(synk): in_mask feeds the pretrained wav2vec attention only.
    B, L = audio.shape
    T = L // FRAME
    Bb = _pick_bb(B, T)

    # raw f32 frames; no wrapper-side pad/cast pass (bf16 cast happens in-kernel)
    frames = audio[:, : T * FRAME].reshape(B, T, FRAME)
    mask3 = out_mask.astype(jnp.float32).reshape(B, 1, T)

    weight_list = _prepare_weights(params)

    def _zero_map(rank):
        return lambda g: (0,) * rank

    # TODO(synk): weight operands have constant block indices; they could take
    #             pipeline_mode=pl.Buffered(1) (single buffering) to shave a
    #             little VMEM / step-0 DMA bookkeeping.
    weight_specs = [pl.BlockSpec(w.shape, _zero_map(w.ndim)) for w in weight_list]

    ctc, seg = pl.pallas_call(
        shas_kernel,
        out_shape=(
            jax.ShapeDtypeStruct((B, T, VOCAB_CTC), jnp.float32),   # stored directly, no XLA slice
            jax.ShapeDtypeStruct((B, 1, T), jnp.float32),           # lane-dense seg
        ),
        grid_spec=pltpu.PrefetchScalarGridSpec(
            num_scalar_prefetch=0,
            grid=(B // Bb,),
            in_specs=[
                pl.BlockSpec((Bb, T, FRAME), lambda g: (g, 0, 0)),  # framed audio (f32)
                pl.BlockSpec((Bb, 1, T), lambda g: (g, 0, 0)),      # out_mask
            ] + weight_specs,
            out_specs=[
                pl.BlockSpec((Bb, T, VOCAB_CTC), lambda g: (g, 0, 0)),
                pl.BlockSpec((Bb, 1, T), lambda g: (g, 0, 0)),
            ],
        ),
        compiler_params=pltpu.CompilerParams(
            dimension_semantics=("parallel",),
            vmem_limit_bytes=32 * 1024 * 1024),
    )(frames, mask3, *weight_list)

    return ctc, seg[:, 0, :]


# --------------------------------- main ---------------------------------------
if __name__ == "__main__":
    key = jax.random.PRNGKey(0)
    k_audio, k_params = jax.random.split(key)

    B = 2
    T = 8
    L = T * FRAME                      # 2560 audio samples -> 8 frames

    audio = jax.random.normal(k_audio, (B, L), dtype=jnp.float32)
    in_mask = jnp.ones((B, L), dtype=jnp.int32)
    out_mask = jnp.ones((B, T), dtype=jnp.int32)

    params = init_params(k_params)

    target_ctc, seg_logits = shas_forward(audio, in_mask, out_mask, params)
    jax.block_until_ready((target_ctc, seg_logits))

    assert target_ctc.shape == (B, T, VOCAB_CTC), target_ctc.shape
    assert seg_logits.shape == (B, T), seg_logits.shape
    assert bool(jnp.all(jnp.isfinite(target_ctc))) and bool(jnp.all(jnp.isfinite(seg_logits)))

    print("KERNEL_OK")
</pallas_src>

<mosaic_0001>
module attributes {stable_mosaic.version = 11 : i64} {
  func.func @shas_kernel(%arg0: i32, %arg1: memref<1x8x320xf32, #tpu.memory_space<vmem>>, %arg2: memref<1x1x8xf32, #tpu.memory_space<vmem>>, %arg3: memref<320x64xbf16, #tpu.memory_space<vmem>>, %arg4: memref<1x64xf32, #tpu.memory_space<vmem>>, %arg5: memref<64x16xbf16, #tpu.memory_space<vmem>>, %arg6: memref<1x16xf32, #tpu.memory_space<vmem>>, %arg7: memref<1x64xf32, #tpu.memory_space<vmem>>, %arg8: memref<1x64xf32, #tpu.memory_space<vmem>>, %arg9: memref<64x128xbf16, #tpu.memory_space<vmem>>, %arg10: memref<1x128xf32, #tpu.memory_space<vmem>>, %arg11: memref<64x512xbf16, #tpu.memory_space<vmem>>, %arg12: memref<1x512xf32, #tpu.memory_space<vmem>>, %arg13: memref<1x64xf32, #tpu.memory_space<vmem>>, %arg14: memref<1x64xf32, #tpu.memory_space<vmem>>, %arg15: memref<1x64xf32, #tpu.memory_space<vmem>>, %arg16: memref<64x256xbf16, #tpu.memory_space<vmem>>, %arg17: memref<1x256xf32, #tpu.memory_space<vmem>>, %arg18: memref<256x64xbf16, #tpu.memory_space<vmem>>, %arg19: memref<1x64xf32, #tpu.memory_space<vmem>>, %arg20: memref<1x64xf32, #tpu.memory_space<vmem>>, %arg21: memref<1x64xf32, #tpu.memory_space<vmem>>, %arg22: memref<1x64xf32, #tpu.memory_space<vmem>>, %arg23: memref<1x1xf32, #tpu.memory_space<vmem>>, %arg24: memref<1x8x16xf32, #tpu.memory_space<vmem>>, %arg25: memref<1x1x8xf32, #tpu.memory_space<vmem>>) attributes {dimension_semantics = [#tpu.dimension_semantics<parallel>], iteration_bounds = array<i64: 2>, scalar_prefetch = 0 : i64, scratch_operands = 0 : i64, tpu.core_type = #tpu.core_type<tc>, window_params = [{transform_indices = @transform_0, window_bounds = array<i64: 1, 8, 320>}, {transform_indices = @transform_1, window_bounds = array<i64: 1, 1, 8>}, {pipeline_mode = #tpu.pipeline_mode<synchronous>, transform_indices = @transform_2, window_bounds = array<i64: 320, 64>}, {pipeline_mode = #tpu.pipeline_mode<synchronous>, transform_indices = @transform_3, window_bounds = array<i64: 1, 64>}, {pipeline_mode = #tpu.pipeline_mode<synchronous>, transform_indices = @transform_4, window_bounds = array<i64: 64, 16>}, {pipeline_mode = #tpu.pipeline_mode<synchronous>, transform_indices = @transform_5, window_bounds = array<i64: 1, 16>}, {pipeline_mode = #tpu.pipeline_mode<synchronous>, transform_indices = @transform_6, window_bounds = array<i64: 1, 64>}, {pipeline_mode = #tpu.pipeline_mode<synchronous>, transform_indices = @transform_7, window_bounds = array<i64: 1, 64>}, {pipeline_mode = #tpu.pipeline_mode<synchronous>, transform_indices = @transform_8, window_bounds = array<i64: 64, 128>}, {pipeline_mode = #tpu.pipeline_mode<synchronous>, transform_indices = @transform_9, window_bounds = array<i64: 1, 128>}, {pipeline_mode = #tpu.pipeline_mode<synchronous>, transform_indices = @transform_10, window_bounds = array<i64: 64, 512>}, {pipeline_mode = #tpu.pipeline_mode<synchronous>, transform_indices = @transform_11, window_bounds = array<i64: 1, 512>}, {pipeline_mode = #tpu.pipeline_mode<synchronous>, transform_indices = @transform_12, window_bounds = array<i64: 1, 64>}, {pipeline_mode = #tpu.pipeline_mode<synchronous>, transform_indices = @transform_13, window_bounds = array<i64: 1, 64>}, {pipeline_mode = #tpu.pipeline_mode<synchronous>, transform_indices = @transform_14, window_bounds = array<i64: 1, 64>}, {pipeline_mode = #tpu.pipeline_mode<synchronous>, transform_indices = @transform_15, window_bounds = array<i64: 64, 256>}, {pipeline_mode = #tpu.pipeline_mode<synchronous>, transform_indices = @transform_16, window_bounds = array<i64: 1, 256>}, {pipeline_mode = #tpu.pipeline_mode<synchronous>, transform_indices = @transform_17, window_bounds = array<i64: 256, 64>}, {pipeline_mode = #tpu.pipeline_mode<synchronous>, transform_indices = @transform_18, window_bounds = array<i64: 1, 64>}, {pipeline_mode = #tpu.pipeline_mode<synchronous>, transform_indices = @transform_19, window_bounds = array<i64: 1, 64>}, {pipeline_mode = #tpu.pipeline_mode<synchronous>, transform_indices = @transform_20, window_bounds = array<i64: 1, 64>}, {pipeline_mode = #tpu.pipeline_mode<synchronous>, transform_indices = @transform_21, window_bounds = array<i64: 1, 64>}, {pipeline_mode = #tpu.pipeline_mode<synchronous>, transform_indices = @transform_22, window_bounds = array<i64: 1, 1>}, {transform_indices = @transform_23, window_bounds = array<i64: 1, 8, 16>}, {transform_indices = @transform_24, window_bounds = array<i64: 1, 1, 8>}]} {
    %c0 = arith.constant 0 : index
    %c0_0 = arith.constant 0 : index
    %c0_1 = arith.constant 0 : index
    %0 = vector.load %arg1[%c0, %c0_0, %c0_1] : memref<1x8x320xf32, #tpu.memory_space<vmem>>, vector<1x8x320xf32>
    %1 = vector.shape_cast %0 : vector<1x8x320xf32> to vector<8x320xf32>
    %2 = arith.truncf %1 : vector<8x320xf32> to vector<8x320xbf16>
    %c0_2 = arith.constant 0 : index
    %c0_3 = arith.constant 0 : index
    %3 = vector.load %arg3[%c0_2, %c0_3] : memref<320x64xbf16, #tpu.memory_space<vmem>>, vector<320x64xbf16>
    %cst = arith.constant dense<0.000000e+00> : vector<8x64xf32>
    %4 = tpu.matmul %2, %3, %cst {dimension_numbers = #tpu.dot_dimension_numbers<[1], [0], [0], [1], [0, 0, 1, 1], [], []>} : vector<8x320xbf16>, vector<320x64xbf16>, vector<8x64xf32> -> vector<8x64xf32>
    %c0_4 = arith.constant 0 : index
    %c0_5 = arith.constant 0 : index
    %5 = vector.load %arg4[%c0_4, %c0_5] : memref<1x64xf32, #tpu.memory_space<vmem>>, vector<1x64xf32>
    %6 = vector.broadcast %5 : vector<1x64xf32> to vector<8x64xf32>
    %7 = arith.addf %4, %6 : vector<8x64xf32>
    %cst_6 = arith.constant 5.000000e-01 : f32
    %8 = vector.broadcast %cst_6 : f32 to vector<8x64xf32>
    %9 = arith.mulf %8, %7 : vector<8x64xf32>
    %cst_7 = arith.constant 4.471500e-02 : f32
    %10 = vector.broadcast %cst_7 : f32 to vector<8x64xf32>
    %11 = arith.mulf %10, %7 : vector<8x64xf32>
    %12 = arith.mulf %11, %7 : vector<8x64xf32>
    %13 = arith.mulf %12, %7 : vector<8x64xf32>
    %14 = arith.addf %7, %13 : vector<8x64xf32>
    %cst_8 = arith.constant 0.797884583 : f32
    %15 = vector.broadcast %cst_8 : f32 to vector<8x64xf32>
    %16 = arith.mulf %15, %14 : vector<8x64xf32>
    %17 = math.tanh %16 : vector<8x64xf32>
    %cst_9 = arith.constant 1.000000e+00 : f32
    %18 = vector.broadcast %cst_9 : f32 to vector<8x64xf32>
    %19 = arith.addf %18, %17 : vector<8x64xf32>
    %20 = arith.mulf %9, %19 : vector<8x64xf32>
    %21 = arith.truncf %20 : vector<8x64xf32> to vector<8x64xbf16>
    %c0_10 = arith.constant 0 : index
    %c0_11 = arith.constant 0 : index
    %22 = vector.load %arg5[%c0_10, %c0_11] : memref<64x16xbf16, #tpu.memory_space<vmem>>, vector<64x16xbf16>
    %cst_12 = arith.constant dense<0.000000e+00> : vector<8x16xf32>
    %23 = tpu.matmul %21, %22, %cst_12 {dimension_numbers = #tpu.dot_dimension_numbers<[1], [0], [0], [1], [0, 0, 1, 1], [], []>} : vector<8x64xbf16>, vector<64x16xbf16>, vector<8x16xf32> -> vector<8x16xf32>
    %c0_13 = arith.constant 0 : index
    %c0_14 = arith.constant 0 : index
    %24 = vector.load %arg6[%c0_13, %c0_14] : memref<1x16xf32, #tpu.memory_space<vmem>>, vector<1x16xf32>
    %25 = vector.broadcast %24 : vector<1x16xf32> to vector<8x16xf32>
    %26 = arith.addf %23, %25 : vector<8x16xf32>
    %27 = vector.shape_cast %26 : vector<8x16xf32> to vector<1x8x16xf32>
    %c0_15 = arith.constant 0 : index
    %c0_16 = arith.constant 0 : index
    %c0_17 = arith.constant 0 : index
    %28 = vector.load %arg24[%c0_15, %c0_16, %c0_17] : memref<1x8x16xf32, #tpu.memory_space<vmem>>, vector<1x8x16xf32>
    tpu.vector_store %arg24[%c0_15, %c0_16, %c0_17], %27 {strides = array<i32>} : memref<1x8x16xf32, #tpu.memory_space<vmem>>, vector<1x8x16xf32>,
    %c0_18 = arith.constant 0 : index
    %c0_19 = arith.constant 0 : index
    %c0_20 = arith.constant 0 : index
    %29 = vector.load %arg2[%c0_18, %c0_19, %c0_20] : memref<1x1x8xf32, #tpu.memory_space<vmem>>, vector<1x1x8xf32>
    %30 = vector.shape_cast %29 : vector<1x1x8xf32> to vector<1x8xf32>
    %cst_21 = arith.constant 0.000000e+00 : f32
    %31 = vector.broadcast %cst_21 : f32 to vector<1x8xf32>
    %32 = arith.cmpf ogt, %30, %31 : vector<1x8xf32>
    %cst_22 = arith.constant 0.000000e+00 : f32
    %cst_23 = arith.constant -1.000000e+09 : f32
    %33 = vector.broadcast %cst_22 : f32 to vector<1x8xf32>
    %34 = vector.broadcast %cst_23 : f32 to vector<1x8xf32>
    %35 = arith.select %32, %33, %34 : vector<1x8xi1>, vector<1x8xf32>
    %c0_24 = arith.constant 0 : index
    %c0_25 = arith.constant 0 : index
    %36 = vector.load %arg7[%c0_24, %c0_25] : memref<1x64xf32, #tpu.memory_space<vmem>>, vector<1x64xf32>
    %c0_26 = arith.constant 0 : index
    %c0_27 = arith.constant 0 : index
    %37 = vector.load %arg8[%c0_26, %c0_27] : memref<1x64xf32, #tpu.memory_space<vmem>>, vector<1x64xf32>
    %cst_28 = arith.constant dense<0.000000e+00> : vector<8xf32>
    %38 = vector.multi_reduction <add>, %20, %cst_28 [1] : vector<8x64xf32> to vector<8xf32>
    %39 = vector.shape_cast %38 : vector<8xf32> to vector<8x1xf32>
    %cst_29 = arith.constant 6.400000e+01 : f32
    %40 = vector.broadcast %cst_29 : f32 to vector<8x1xf32>
    %41 = arith.divf %39, %40 : vector<8x1xf32>
    %42 = vector.broadcast %41 : vector<8x1xf32> to vector<8x64xf32>
    %43 = arith.subf %20, %42 : vector<8x64xf32>
    %44 = arith.mulf %43, %43 : vector<8x64xf32>
    %cst_30 = arith.constant dense<0.000000e+00> : vector<8xf32>
    %45 = vector.multi_reduction <add>, %44, %cst_30 [1] : vector<8x64xf32> to vector<8xf32>
    %46 = vector.shape_cast %45 : vector<8xf32> to vector<8x1xf32>
    %cst_31 = arith.constant 6.400000e+01 : f32
    %47 = vector.broadcast %cst_31 : f32 to vector<8x1xf32>
    %48 = arith.divf %46, %47 : vector<8x1xf32>
    %49 = vector.broadcast %41 : vector<8x1xf32> to vector<8x64xf32>
    %50 = arith.subf %20, %49 : vector<8x64xf32>
    %cst_32 = arith.constant 9.99999974E-6 : f32
    %51 = vector.broadcast %cst_32 : f32 to vector<8x1xf32>
    %52 = arith.addf %48, %51 : vector<8x1xf32>
    %53 = math.rsqrt %52 : vector<8x1xf32>
    %54 = vector.broadcast %53 : vector<8x1xf32> to vector<8x64xf32>
    %55 = arith.mulf %50, %54 : vector<8x64xf32>
    %56 = vector.broadcast %36 : vector<1x64xf32> to vector<8x64xf32>
    %57 = arith.mulf %55, %56 : vector<8x64xf32>
    %58 = vector.broadcast %37 : vector<1x64xf32> to vector<8x64xf32>
    %59 = arith.addf %57, %58 : vector<8x64xf32>
    %60 = arith.truncf %59 : vector<8x64xf32> to vector<8x64xbf16>
    %c0_33 = arith.constant 0 : index
    %c0_34 = arith.constant 0 : index
    %61 = vector.load %arg9[%c0_33, %c0_34] : memref<64x128xbf16, #tpu.memory_space<vmem>>, vector<64x128xbf16>
    %cst_35 = arith.constant dense<0.000000e+00> : vector<8x128xf32>
    %62 = tpu.matmul %60, %61, %cst_35 {dimension_numbers = #tpu.dot_dimension_numbers<[1], [0], [0], [1], [0, 0, 1, 1], [], []>} : vector<8x64xbf16>, vector<64x128xbf16>, vector<8x128xf32> -> vector<8x128xf32>
    %c0_36 = arith.constant 0 : index
    %c0_37 = arith.constant 0 : index
    %63 = vector.load %arg10[%c0_36, %c0_37] : memref<1x128xf32, #tpu.memory_space<vmem>>, vector<1x128xf32>
    %64 = vector.broadcast %63 : vector<1x128xf32> to vector<8x128xf32>
    %65 = arith.addf %62, %64 : vector<8x128xf32>
    %66 = arith.truncf %65 : vector<8x128xf32> to vector<8x128xbf16>
    %c0_38 = arith.constant 0 : index
    %c0_39 = arith.constant 0 : index
    %67 = vector.load %arg11[%c0_38, %c0_39] : memref<64x512xbf16, #tpu.memory_space<vmem>>, vector<64x512xbf16>
    %cst_40 = arith.constant dense<0.000000e+00> : vector<8x512xf32>
    %68 = tpu.matmul %60, %67, %cst_40 {dimension_numbers = #tpu.dot_dimension_numbers<[1], [0], [0], [1], [0, 0, 1, 1], [], []>} : vector<8x64xbf16>, vector<64x512xbf16>, vector<8x512xf32> -> vector<8x512xf32>
    %c0_41 = arith.constant 0 : index
    %c0_42 = arith.constant 0 : index
    %69 = vector.load %arg12[%c0_41, %c0_42] : memref<1x512xf32, #tpu.memory_space<vmem>>, vector<1x512xf32>
    %70 = vector.broadcast %69 : vector<1x512xf32> to vector<8x512xf32>
    %71 = arith.addf %68, %70 : vector<8x512xf32>
    %72 = arith.truncf %71 : vector<8x512xf32> to vector<8x512xbf16>
    %73 = vector.shape_cast %35 : vector<1x8xf32> to vector<1x8xf32>
    %74 = vector.broadcast %73 : vector<1x8xf32> to vector<8x8xf32>
    %cst_43 = arith.constant 0.000000e+00 : f32
    %75 = vector.broadcast %cst_43 : f32 to vector<8x64xf32>
    %76 = vector.extract_strided_slice %66 {offsets = [0, 0], sizes = [8, 8], strides = [1, 1]} : vector<8x128xbf16> to vector<8x8xbf16>
    %77 = vector.extract_strided_slice %66 {offsets = [0, 64], sizes = [8, 8], strides = [1, 1]} : vector<8x128xbf16> to vector<8x8xbf16>
    %78 = vector.extract_strided_slice %72 {offsets = [0, 0], sizes = [8, 64], strides = [1, 1]} : vector<8x512xbf16> to vector<8x64xbf16>
    %cst_44 = arith.constant dense<0.000000e+00> : vector<8x8xf32>
    %79 = tpu.matmul %76, %77, %cst_44 {dimension_numbers = #tpu.dot_dimension_numbers<[1], [1], [0], [0], [0, 0, 1, 0], [], []>} : vector<8x8xbf16>, vector<8x8xbf16>, vector<8x8xf32> -> vector<8x8xf32>
    %80 = arith.addf %79, %74 : vector<8x8xf32>
    %cst_45 = arith.constant dense<0xFF800000> : vector<8xf32>
    %81 = vector.multi_reduction <maximumf>, %80, %cst_45 [1] : vector<8x8xf32> to vector<8xf32>
    %82 = vector.shape_cast %81 : vector<8xf32> to vector<8x1xf32>
    %83 = vector.broadcast %82 : vector<8x1xf32> to vector<8x8xf32>
    %84 = arith.subf %80, %83 : vector<8x8xf32>
    %85 = math.exp %84 : vector<8x8xf32>
    %cst_46 = arith.constant dense<0.000000e+00> : vector<8xf32>
    %86 = vector.multi_reduction <add>, %85, %cst_46 [1] : vector<8x8xf32> to vector<8xf32>
    %87 = vector.shape_cast %86 : vector<8xf32> to vector<8x1xf32>
    %88 = arith.truncf %85 : vector<8x8xf32> to vector<8x8xbf16>
    %cst_47 = arith.constant dense<0.000000e+00> : vector<8x64xf32>
    %89 = tpu.matmul %88, %78, %cst_47 {dimension_numbers = #tpu.dot_dimension_numbers<[1], [0], [0], [1], [0, 0, 1, 1], [], []>} : vector<8x8xbf16>, vector<8x64xbf16>, vector<8x64xf32> -> vector<8x64xf32>
    %90 = tpu.reciprocal %87 {approx = true} : vector<8x1xf32> -> vector<8x1xf32>
    %91 = vector.broadcast %90 : vector<8x1xf32> to vector<8x64xf32>
    %92 = arith.mulf %89, %91 : vector<8x64xf32>
    %93 = arith.addf %75, %92 : vector<8x64xf32>
    %94 = vector.extract_strided_slice %66 {offsets = [0, 8], sizes = [8, 8], strides = [1, 1]} : vector<8x128xbf16> to vector<8x8xbf16>
    %95 = vector.extract_strided_slice %66 {offsets = [0, 72], sizes = [8, 8], strides = [1, 1]} : vector<8x128xbf16> to vector<8x8xbf16>
    %96 = vector.extract_strided_slice %72 {offsets = [0, 64], sizes = [8, 64], strides = [1, 1]} : vector<8x512xbf16> to vector<8x64xbf16>
    %cst_48 = arith.constant dense<0.000000e+00> : vector<8x8xf32>
    %97 = tpu.matmul %94, %95, %cst_48 {dimension_numbers = #tpu.dot_dimension_numbers<[1], [1], [0], [0], [0, 0, 1, 0], [], []>} : vector<8x8xbf16>, vector<8x8xbf16>, vector<8x8xf32> -> vector<8x8xf32>
    %98 = arith.addf %97, %74 : vector<8x8xf32>
    %cst_49 = arith.constant dense<0xFF800000> : vector<8xf32>
    %99 = vector.multi_reduction <maximumf>, %98, %cst_49 [1] : vector<8x8xf32> to vector<8xf32>
    %100 = vector.shape_cast %99 : vector<8xf32> to vector<8x1xf32>
    %101 = vector.broadcast %100 : vector<8x1xf32> to vector<8x8xf32>
    %102 = arith.subf %98, %101 : vector<8x8xf32>
    %103 = math.exp %102 : vector<8x8xf32>
    %cst_50 = arith.constant dense<0.000000e+00> : vector<8xf32>
    %104 = vector.multi_reduction <add>, %103, %cst_50 [1] : vector<8x8xf32> to vector<8xf32>
    %105 = vector.shape_cast %104 : vector<8xf32> to vector<8x1xf32>
    %106 = arith.truncf %103 : vector<8x8xf32> to vector<8x8xbf16>
    %cst_51 = arith.constant dense<0.000000e+00> : vector<8x64xf32>
    %107 = tpu.matmul %106, %96, %cst_51 {dimension_numbers = #tpu.dot_dimension_numbers<[1], [0], [0], [1], [0, 0, 1, 1], [], []>} : vector<8x8xbf16>, vector<8x64xbf16>, vector<8x64xf32> -> vector<8x64xf32>
    %108 = tpu.reciprocal %105 {approx = true} : vector<8x1xf32> -> vector<8x1xf32>
    %109 = vector.broadcast %108 : vector<8x1xf32> to vector<8x64xf32>
    %110 = arith.mulf %107, %109 : vector<8x64xf32>
    %111 = arith.addf %93, %110 : vector<8x64xf32>
    %112 = vector.extract_strided_slice %66 {offsets = [0, 16], sizes = [8, 8], strides = [1, 1]} : vector<8x128xbf16> to vector<8x8xbf16>
    %113 = vector.extract_strided_slice %66 {offsets = [0, 80], sizes = [8, 8], strides = [1, 1]} : vector<8x128xbf16> to vector<8x8xbf16>
    %114 = vector.extract_strided_slice %72 {offsets = [0, 128], sizes = [8, 64], strides = [1, 1]} : vector<8x512xbf16> to vector<8x64xbf16>
    %cst_52 = arith.constant dense<0.000000e+00> : vector<8x8xf32>
    %115 = tpu.matmul %112, %113, %cst_52 {dimension_numbers = #tpu.dot_dimension_numbers<[1], [1], [0], [0], [0, 0, 1, 0], [], []>} : vector<8x8xbf16>, vector<8x8xbf16>, vector<8x8xf32> -> vector<8x8xf32>
    %116 = arith.addf %115, %74 : vector<8x8xf32>
    %cst_53 = arith.constant dense<0xFF800000> : vector<8xf32>
    %117 = vector.multi_reduction <maximumf>, %116, %cst_53 [1] : vector<8x8xf32> to vector<8xf32>
    %118 = vector.shape_cast %117 : vector<8xf32> to vector<8x1xf32>
    %119 = vector.broadcast %118 : vector<8x1xf32> to vector<8x8xf32>
    %120 = arith.subf %116, %119 : vector<8x8xf32>
    %121 = math.exp %120 : vector<8x8xf32>
    %cst_54 = arith.constant dense<0.000000e+00> : vector<8xf32>
    %122 = vector.multi_reduction <add>, %121, %cst_54 [1] : vector<8x8xf32> to vector<8xf32>
    %123 = vector.shape_cast %122 : vector<8xf32> to vector<8x1xf32>
    %124 = arith.truncf %121 : vector<8x8xf32> to vector<8x8xbf16>
    %cst_55 = arith.constant dense<0.000000e+00> : vector<8x64xf32>
    %125 = tpu.matmul %124, %114, %cst_55 {dimension_numbers = #tpu.dot_dimension_numbers<[1], [0], [0], [1], [0, 0, 1, 1], [], []>} : vector<8x8xbf16>, vector<8x64xbf16>, vector<8x64xf32> -> vector<8x64xf32>
    %126 = tpu.reciprocal %123 {approx = true} : vector<8x1xf32> -> vector<8x1xf32>
    %127 = vector.broadcast %126 : vector<8x1xf32> to vector<8x64xf32>
    %128 = arith.mulf %125, %127 : vector<8x64xf32>
    %129 = arith.addf %111, %128 : vector<8x64xf32>
    %130 = vector.extract_strided_slice %66 {offsets = [0, 24], sizes = [8, 8], strides = [1, 1]} : vector<8x128xbf16> to vector<8x8xbf16>
    %131 = vector.extract_strided_slice %66 {offsets = [0, 88], sizes = [8, 8], strides = [1, 1]} : vector<8x128xbf16> to vector<8x8xbf16>
    %132 = vector.extract_strided_slice %72 {offsets = [0, 192], sizes = [8, 64], strides = [1, 1]} : vector<8x512xbf16> to vector<8x64xbf16>
    %cst_56 = arith.constant dense<0.000000e+00> : vector<8x8xf32>
    %133 = tpu.matmul %130, %131, %cst_56 {dimension_numbers = #tpu.dot_dimension_numbers<[1], [1], [0], [0], [0, 0, 1, 0], [], []>} : vector<8x8xbf16>, vector<8x8xbf16>, vector<8x8xf32> -> vector<8x8xf32>
    %134 = arith.addf %133, %74 : vector<8x8xf32>
    %cst_57 = arith.constant dense<0xFF800000> : vector<8xf32>
    %135 = vector.multi_reduction <maximumf>, %134, %cst_57 [1] : vector<8x8xf32> to vector<8xf32>
    %136 = vector.shape_cast %135 : vector<8xf32> to vector<8x1xf32>
    %137 = vector.broadcast %136 : vector<8x1xf32> to vector<8x8xf32>
    %138 = arith.subf %134, %137 : vector<8x8xf32>
    %139 = math.exp %138 : vector<8x8xf32>
    %cst_58 = arith.constant dense<0.000000e+00> : vector<8xf32>
    %140 = vector.multi_reduction <add>, %139, %cst_58 [1] : vector<8x8xf32> to vector<8xf32>
    %141 = vector.shape_cast %140 : vector<8xf32> to vector<8x1xf32>
    %142 = arith.truncf %139 : vector<8x8xf32> to vector<8x8xbf16>
    %cst_59 = arith.constant dense<0.000000e+00> : vector<8x64xf32>
    %143 = tpu.matmul %142, %132, %cst_59 {dimension_numbers = #tpu.dot_dimension_numbers<[1], [0], [0], [1], [0, 0, 1, 1], [], []>} : vector<8x8xbf16>, vector<8x64xbf16>, vector<8x64xf32> -> vector<8x64xf32>
    %144 = tpu.reciprocal %141 {approx = true} : vector<8x1xf32> -> vector<8x1xf32>
    %145 = vector.broadcast %144 : vector<8x1xf32> to vector<8x64xf32>
    %146 = arith.mulf %143, %145 : vector<8x64xf32>
    %147 = arith.addf %129, %146 : vector<8x64xf32>
    %148 = vector.extract_strided_slice %66 {offsets = [0, 32], sizes = [8, 8], strides = [1, 1]} : vector<8x128xbf16> to vector<8x8xbf16>
    %149 = vector.extract_strided_slice %66 {offsets = [0, 96], sizes = [8, 8], strides = [1, 1]} : vector<8x128xbf16> to vector<8x8xbf16>
    %150 = vector.extract_strided_slice %72 {offsets = [0, 256], sizes = [8, 64], strides = [1, 1]} : vector<8x512xbf16> to vector<8x64xbf16>
    %cst_60 = arith.constant dense<0.000000e+00> : vector<8x8xf32>
    %151 = tpu.matmul %148, %149, %cst_60 {dimension_numbers = #tpu.dot_dimension_numbers<[1], [1], [0], [0], [0, 0, 1, 0], [], []>} : vector<8x8xbf16>, vector<8x8xbf16>, vector<8x8xf32> -> vector<8x8xf32>
    %152 = arith.addf %151, %74 : vector<8x8xf32>
    %cst_61 = arith.constant dense<0xFF800000> : vector<8xf32>
    %153 = vector.multi_reduction <maximumf>, %152, %cst_61 [1] : vector<8x8xf32> to vector<8xf32>
    %154 = vector.shape_cast %153 : vector<8xf32> to vector<8x1xf32>
    %155 = vector.broadcast %154 : vector<8x1xf32> to vector<8x8xf32>
    %156 = arith.subf %152, %155 : vector<8x8xf32>
    %157 = math.exp %156 : vector<8x8xf32>
    %cst_62 = arith.constant dense<0.000000e+00> : vector<8xf32>
    %158 = vector.multi_reduction <add>, %157, %cst_62 [1] : vector<8x8xf32> to vector<8xf32>
    %159 = vector.shape_cast %158 : vector<8xf32> to vector<8x1xf32>
    %160 = arith.truncf %157 : vector<8x8xf32> to vector<8x8xbf16>
    %cst_63 = arith.constant dense<0.000000e+00> : vector<8x64xf32>
    %161 = tpu.matmul %160, %150, %cst_63 {dimension_numbers = #tpu.dot_dimension_numbers<[1], [0], [0], [1], [0, 0, 1, 1], [], []>} : vector<8x8xbf16>, vector<8x64xbf16>, vector<8x64xf32> -> vector<8x64xf32>
    %162 = tpu.reciprocal %159 {approx = true} : vector<8x1xf32> -> vector<8x1xf32>
    %163 = vector.broadcast %162 : vector<8x1xf32> to vector<8x64xf32>
    %164 = arith.mulf %161, %163 : vector<8x64xf32>
    %165 = arith.addf %147, %164 : vector<8x64xf32>
    %166 = vector.extract_strided_slice %66 {offsets = [0, 40], sizes = [8, 8], strides = [1, 1]} : vector<8x128xbf16> to vector<8x8xbf16>
    %167 = vector.extract_strided_slice %66 {offsets = [0, 104], sizes = [8, 8], strides = [1, 1]} : vector<8x128xbf16> to vector<8x8xbf16>
    %168 = vector.extract_strided_slice %72 {offsets = [0, 320], sizes = [8, 64], strides = [1, 1]} : vector<8x512xbf16> to vector<8x64xbf16>
    %cst_64 = arith.constant dense<0.000000e+00> : vector<8x8xf32>
    %169 = tpu.matmul %166, %167, %cst_64 {dimension_numbers = #tpu.dot_dimension_numbers<[1], [1], [0], [0], [0, 0, 1, 0], [], []>} : vector<8x8xbf16>, vector<8x8xbf16>, vector<8x8xf32> -> vector<8x8xf32>
    %170 = arith.addf %169, %74 : vector<8x8xf32>
    %cst_65 = arith.constant dense<0xFF800000> : vector<8xf32>
    %171 = vector.multi_reduction <maximumf>, %170, %cst_65 [1] : vector<8x8xf32> to vector<8xf32>
    %172 = vector.shape_cast %171 : vector<8xf32> to vector<8x1xf32>
    %173 = vector.broadcast %172 : vector<8x1xf32> to vector<8x8xf32>
    %174 = arith.subf %170, %173 : vector<8x8xf32>
    %175 = math.exp %174 : vector<8x8xf32>
    %cst_66 = arith.constant dense<0.000000e+00> : vector<8xf32>
    %176 = vector.multi_reduction <add>, %175, %cst_66 [1] : vector<8x8xf32> to vector<8xf32>
    %177 = vector.shape_cast %176 : vector<8xf32> to vector<8x1xf32>
    %178 = arith.truncf %175 : vector<8x8xf32> to vector<8x8xbf16>
    %cst_67 = arith.constant dense<0.000000e+00> : vector<8x64xf32>
    %179 = tpu.matmul %178, %168, %cst_67 {dimension_numbers = #tpu.dot_dimension_numbers<[1], [0], [0], [1], [0, 0, 1, 1], [], []>} : vector<8x8xbf16>, vector<8x64xbf16>, vector<8x64xf32> -> vector<8x64xf32>
    %180 = tpu.reciprocal %177 {approx = true} : vector<8x1xf32> -> vector<8x1xf32>
    %181 = vector.broadcast %180 : vector<8x1xf32> to vector<8x64xf32>
    %182 = arith.mulf %179, %181 : vector<8x64xf32>
    %183 = arith.addf %165, %182 : vector<8x64xf32>
    %184 = vector.extract_strided_slice %66 {offsets = [0, 48], sizes = [8, 8], strides = [1, 1]} : vector<8x128xbf16> to vector<8x8xbf16>
    %185 = vector.extract_strided_slice %66 {offsets = [0, 112], sizes = [8, 8], strides = [1, 1]} : vector<8x128xbf16> to vector<8x8xbf16>
    %186 = vector.extract_strided_slice %72 {offsets = [0, 384], sizes = [8, 64], strides = [1, 1]} : vector<8x512xbf16> to vector<8x64xbf16>
    %cst_68 = arith.constant dense<0.000000e+00> : vector<8x8xf32>
    %187 = tpu.matmul %184, %185, %cst_68 {dimension_numbers = #tpu.dot_dimension_numbers<[1], [1], [0], [0], [0, 0, 1, 0], [], []>} : vector<8x8xbf16>, vector<8x8xbf16>, vector<8x8xf32> -> vector<8x8xf32>
    %188 = arith.addf %187, %74 : vector<8x8xf32>
    %cst_69 = arith.constant dense<0xFF800000> : vector<8xf32>
    %189 = vector.multi_reduction <maximumf>, %188, %cst_69 [1] : vector<8x8xf32> to vector<8xf32>
    %190 = vector.shape_cast %189 : vector<8xf32> to vector<8x1xf32>
    %191 = vector.broadcast %190 : vector<8x1xf32> to vector<8x8xf32>
    %192 = arith.subf %188, %191 : vector<8x8xf32>
    %193 = math.exp %192 : vector<8x8xf32>
    %cst_70 = arith.constant dense<0.000000e+00> : vector<8xf32>
    %194 = vector.multi_reduction <add>, %193, %cst_70 [1] : vector<8x8xf32> to vector<8xf32>
    %195 = vector.shape_cast %194 : vector<8xf32> to vector<8x1xf32>
    %196 = arith.truncf %193 : vector<8x8xf32> to vector<8x8xbf16>
    %cst_71 = arith.constant dense<0.000000e+00> : vector<8x64xf32>
    %197 = tpu.matmul %196, %186, %cst_71 {dimension_numbers = #tpu.dot_dimension_numbers<[1], [0], [0], [1], [0, 0, 1, 1], [], []>} : vector<8x8xbf16>, vector<8x64xbf16>, vector<8x64xf32> -> vector<8x64xf32>
    %198 = tpu.reciprocal %195 {approx = true} : vector<8x1xf32> -> vector<8x1xf32>
    %199 = vector.broadcast %198 : vector<8x1xf32> to vector<8x64xf32>
    %200 = arith.mulf %197, %199 : vector<8x64xf32>
    %201 = arith.addf %183, %200 : vector<8x64xf32>
    %202 = vector.extract_strided_slice %66 {offsets = [0, 56], sizes = [8, 8], strides = [1, 1]} : vector<8x128xbf16> to vector<8x8xbf16>
    %203 = vector.extract_strided_slice %66 {offsets = [0, 120], sizes = [8, 8], strides = [1, 1]} : vector<8x128xbf16> to vector<8x8xbf16>
    %204 = vector.extract_strided_slice %72 {offsets = [0, 448], sizes = [8, 64], strides = [1, 1]} : vector<8x512xbf16> to vector<8x64xbf16>
    %cst_72 = arith.constant dense<0.000000e+00> : vector<8x8xf32>
    %205 = tpu.matmul %202, %203, %cst_72 {dimension_numbers = #tpu.dot_dimension_numbers<[1], [1], [0], [0], [0, 0, 1, 0], [], []>} : vector<8x8xbf16>, vector<8x8xbf16>, vector<8x8xf32> -> vector<8x8xf32>
    %206 = arith.addf %205, %74 : vector<8x8xf32>
    %cst_73 = arith.constant dense<0xFF800000> : vector<8xf32>
    %207 = vector.multi_reduction <maximumf>, %206, %cst_73 [1] : vector<8x8xf32> to vector<8xf32>
    %208 = vector.shape_cast %207 : vector<8xf32> to vector<8x1xf32>
    %209 = vector.broadcast %208 : vector<8x1xf32> to vector<8x8xf32>
    %210 = arith.subf %206, %209 : vector<8x8xf32>
    %211 = math.exp %210 : vector<8x8xf32>
    %cst_74 = arith.constant dense<0.000000e+00> : vector<8xf32>
    %212 = vector.multi_reduction <add>, %211, %cst_74 [1] : vector<8x8xf32> to vector<8xf32>
    %213 = vector.shape_cast %212 : vector<8xf32> to vector<8x1xf32>
    %214 = arith.truncf %211 : vector<8x8xf32> to vector<8x8xbf16>
    %cst_75 = arith.constant dense<0.000000e+00> : vector<8x64xf32>
    %215 = tpu.matmul %214, %204, %cst_75 {dimension_numbers = #tpu.dot_dimension_numbers<[1], [0], [0], [1], [0, 0, 1, 1], [], []>} : vector<8x8xbf16>, vector<8x64xbf16>, vector<8x64xf32> -> vector<8x64xf32>
    %216 = tpu.reciprocal %213 {approx = true} : vector<8x1xf32> -> vector<8x1xf32>
    %217 = vector.broadcast %216 : vector<8x1xf32> to vector<8x64xf32>
    %218 = arith.mulf %215, %217 : vector<8x64xf32>
    %219 = arith.addf %201, %218 : vector<8x64xf32>
    %220 = arith.addf %20, %219 : vector<8x64xf32>
    %c0_76 = arith.constant 0 : index
    %c0_77 = arith.constant 0 : index
    %221 = vector.load %arg13[%c0_76, %c0_77] : memref<1x64xf32, #tpu.memory_space<vmem>>, vector<1x64xf32>
    %222 = vector.broadcast %221 : vector<1x64xf32> to vector<8x64xf32>
    %223 = arith.addf %220, %222 : vector<8x64xf32>
    %c0_78 = arith.constant 0 : index
    %c0_79 = arith.constant 0 : index
    %224 = vector.load %arg14[%c0_78, %c0_79] : memref<1x64xf32, #tpu.memory_space<vmem>>, vector<1x64xf32>
    %c0_80 = arith.constant 0 : index
    %c0_81 = arith.constant 0 : index
    %225 = vector.load %arg15[%c0_80, %c0_81] : memref<1x64xf32, #tpu.memory_space<vmem>>, vector<1x64xf32>
    %cst_82 = arith.constant dense<0.000000e+00> : vector<8xf32>
    %226 = vector.multi_reduction <add>, %223, %cst_82 [1] : vector<8x64xf32> to vector<8xf32>
    %227 = vector.shape_cast %226 : vector<8xf32> to vector<8x1xf32>
    %cst_83 = arith.constant 6.400000e+01 : f32
    %228 = vector.broadcast %cst_83 : f32 to vector<8x1xf32>
    %229 = arith.divf %227, %228 : vector<8x1xf32>
    %230 = vector.broadcast %229 : vector<8x1xf32> to vector<8x64xf32>
    %231 = arith.subf %223, %230 : vector<8x64xf32>
    %232 = arith.mulf %231, %231 : vector<8x64xf32>
    %cst_84 = arith.constant dense<0.000000e+00> : vector<8xf32>
    %233 = vector.multi_reduction <add>, %232, %cst_84 [1] : vector<8x64xf32> to vector<8xf32>
    %234 = vector.shape_cast %233 : vector<8xf32> to vector<8x1xf32>
    %cst_85 = arith.constant 6.400000e+01 : f32
    %235 = vector.broadcast %cst_85 : f32 to vector<8x1xf32>
    %236 = arith.divf %234, %235 : vector<8x1xf32>
    %237 = vector.broadcast %229 : vector<8x1xf32> to vector<8x64xf32>
    %238 = arith.subf %223, %237 : vector<8x64xf32>
    %cst_86 = arith.constant 9.99999974E-6 : f32
    %239 = vector.broadcast %cst_86 : f32 to vector<8x1xf32>
    %240 = arith.addf %236, %239 : vector<8x1xf32>
    %241 = math.rsqrt %240 : vector<8x1xf32>
    %242 = vector.broadcast %241 : vector<8x1xf32> to vector<8x64xf32>
    %243 = arith.mulf %238, %242 : vector<8x64xf32>
    %244 = vector.broadcast %224 : vector<1x64xf32> to vector<8x64xf32>
    %245 = arith.mulf %243, %244 : vector<8x64xf32>
    %246 = vector.broadcast %225 : vector<1x64xf32> to vector<8x64xf32>
    %247 = arith.addf %245, %246 : vector<8x64xf32>
    %248 = arith.truncf %247 : vector<8x64xf32> to vector<8x64xbf16>
    %c0_87 = arith.constant 0 : index
    %c0_88 = arith.constant 0 : index
    %249 = vector.load %arg16[%c0_87, %c0_88] : memref<64x256xbf16, #tpu.memory_space<vmem>>, vector<64x256xbf16>
    %cst_89 = arith.constant dense<0.000000e+00> : vector<8x256xf32>
    %250 = tpu.matmul %248, %249, %cst_89 {dimension_numbers = #tpu.dot_dimension_numbers<[1], [0], [0], [1], [0, 0, 1, 1], [], []>} : vector<8x64xbf16>, vector<64x256xbf16>, vector<8x256xf32> -> vector<8x256xf32>
    %c0_90 = arith.constant 0 : index
    %c0_91 = arith.constant 0 : index
    %251 = vector.load %arg17[%c0_90, %c0_91] : memref<1x256xf32, #tpu.memory_space<vmem>>, vector<1x256xf32>
    %252 = vector.broadcast %251 : vector<1x256xf32> to vector<8x256xf32>
    %253 = arith.addf %250, %252 : vector<8x256xf32>
    %cst_92 = arith.constant 5.000000e-01 : f32
    %254 = vector.broadcast %cst_92 : f32 to vector<8x256xf32>
    %255 = arith.mulf %254, %253 : vector<8x256xf32>
    %cst_93 = arith.constant 4.471500e-02 : f32
    %256 = vector.broadcast %cst_93 : f32 to vector<8x256xf32>
    %257 = arith.mulf %256, %253 : vector<8x256xf32>
    %258 = arith.mulf %257, %253 : vector<8x256xf32>
    %259 = arith.mulf %258, %253 : vector<8x256xf32>
    %260 = arith.addf %253, %259 : vector<8x256xf32>
    %cst_94 = arith.constant 0.797884583 : f32
    %261 = vector.broadcast %cst_94 : f32 to vector<8x256xf32>
    %262 = arith.mulf %261, %260 : vector<8x256xf32>
    %263 = math.tanh %262 : vector<8x256xf32>
    %cst_95 = arith.constant 1.000000e+00 : f32
    %264 = vector.broadcast %cst_95 : f32 to vector<8x256xf32>
    %265 = arith.addf %264, %263 : vector<8x256xf32>
    %266 = arith.mulf %255, %265 : vector<8x256xf32>
    %267 = arith.truncf %266 : vector<8x256xf32> to vector<8x256xbf16>
    %c0_96 = arith.constant 0 : index
    %c0_97 = arith.constant 0 : index
    %268 = vector.load %arg18[%c0_96, %c0_97] : memref<256x64xbf16, #tpu.memory_space<vmem>>, vector<256x64xbf16>
    %cst_98 = arith.constant dense<0.000000e+00> : vector<8x64xf32>
    %269 = tpu.matmul %267, %268, %cst_98 {dimension_numbers = #tpu.dot_dimension_numbers<[1], [0], [0], [1], [0, 0, 1, 1], [], []>} : vector<8x256xbf16>, vector<256x64xbf16>, vector<8x64xf32> -> vector<8x64xf32>
    %c0_99 = arith.constant 0 : index
    %c0_100 = arith.constant 0 : index
    %270 = vector.load %arg19[%c0_99, %c0_100] : memref<1x64xf32, #tpu.memory_space<vmem>>, vector<1x64xf32>
    %271 = vector.broadcast %270 : vector<1x64xf32> to vector<8x64xf32>
    %272 = arith.addf %269, %271 : vector<8x64xf32>
    %273 = arith.addf %223, %272 : vector<8x64xf32>
    %c0_101 = arith.constant 0 : index
    %c0_102 = arith.constant 0 : index
    %274 = vector.load %arg20[%c0_101, %c0_102] : memref<1x64xf32, #tpu.memory_space<vmem>>, vector<1x64xf32>
    %c0_103 = arith.constant 0 : index
    %c0_104 = arith.constant 0 : index
    %275 = vector.load %arg21[%c0_103, %c0_104] : memref<1x64xf32, #tpu.memory_space<vmem>>, vector<1x64xf32>
    %cst_105 = arith.constant dense<0.000000e+00> : vector<8xf32>
    %276 = vector.multi_reduction <add>, %273, %cst_105 [1] : vector<8x64xf32> to vector<8xf32>
    %277 = vector.shape_cast %276 : vector<8xf32> to vector<8x1xf32>
    %cst_106 = arith.constant 6.400000e+01 : f32
    %278 = vector.broadcast %cst_106 : f32 to vector<8x1xf32>
    %279 = arith.divf %277, %278 : vector<8x1xf32>
    %280 = vector.broadcast %279 : vector<8x1xf32> to vector<8x64xf32>
    %281 = arith.subf %273, %280 : vector<8x64xf32>
    %282 = arith.mulf %281, %281 : vector<8x64xf32>
    %cst_107 = arith.constant dense<0.000000e+00> : vector<8xf32>
    %283 = vector.multi_reduction <add>, %282, %cst_107 [1] : vector<8x64xf32> to vector<8xf32>
    %284 = vector.shape_cast %283 : vector<8xf32> to vector<8x1xf32>
    %cst_108 = arith.constant 6.400000e+01 : f32
    %285 = vector.broadcast %cst_108 : f32 to vector<8x1xf32>
    %286 = arith.divf %284, %285 : vector<8x1xf32>
    %287 = vector.broadcast %279 : vector<8x1xf32> to vector<8x64xf32>
    %288 = arith.subf %273, %287 : vector<8x64xf32>
    %cst_109 = arith.constant 9.99999974E-6 : f32
    %289 = vector.broadcast %cst_109 : f32 to vector<8x1xf32>
    %290 = arith.addf %286, %289 : vector<8x1xf32>
    %291 = math.rsqrt %290 : vector<8x1xf32>
    %292 = vector.broadcast %291 : vector<8x1xf32> to vector<8x64xf32>
    %293 = arith.mulf %288, %292 : vector<8x64xf32>
    %294 = vector.broadcast %274 : vector<1x64xf32> to vector<8x64xf32>
    %295 = arith.mulf %293, %294 : vector<8x64xf32>
    %296 = vector.broadcast %275 : vector<1x64xf32> to vector<8x64xf32>
    %297 = arith.addf %295, %296 : vector<8x64xf32>
    %298 = vector.shape_cast %297 : vector<8x64xf32> to vector<1x8x64xf32>
    %c0_110 = arith.constant 0 : index
    %c0_111 = arith.constant 0 : index
    %299 = vector.load %arg22[%c0_110, %c0_111] : memref<1x64xf32, #tpu.memory_space<vmem>>, vector<1x64xf32>
    %300 = vector.shape_cast %299 : vector<1x64xf32> to vector<1x1x64xf32>
    %301 = vector.broadcast %300 : vector<1x1x64xf32> to vector<1x8x64xf32>
    %302 = arith.mulf %298, %301 : vector<1x8x64xf32>
    %cst_112 = arith.constant dense<0.000000e+00> : vector<1x8xf32>
    %303 = vector.multi_reduction <add>, %302, %cst_112 [2] : vector<1x8x64xf32> to vector<1x8xf32>
    %c0_113 = arith.constant 0 : index
    %c0_114 = arith.constant 0 : index
    %304 = vector.load %arg23[%c0_113, %c0_114] : memref<1x1xf32, #tpu.memory_space<vmem>>, vector<1x1xf32>
    %305 = vector.broadcast %304 : vector<1x1xf32> to vector<1x8xf32>
    %306 = arith.addf %303, %305 : vector<1x8xf32>
    %307 = vector.shape_cast %306 : vector<1x8xf32> to vector<1x1x8xf32>
    %c0_115 = arith.constant 0 : index
    %c0_116 = arith.constant 0 : index
    %c0_117 = arith.constant 0 : index
    %308 = vector.load %arg25[%c0_115, %c0_116, %c0_117] : memref<1x1x8xf32, #tpu.memory_space<vmem>>, vector<1x1x8xf32>
    tpu.vector_store %arg25[%c0_115, %c0_116, %c0_117], %307 {strides = array<i32>} : memref<1x1x8xf32, #tpu.memory_space<vmem>>, vector<1x1x8xf32>,
    return
  }
  func.func @transform_0(%arg0: i32) -> (i32, i32, i32) {
    %c0_i32 = arith.constant 0 : i32
    %c0_i32_0 = arith.constant 0 : i32
    %c0_i32_1 = arith.constant 0 : i32
    return %arg0, %c0_i32, %c0_i32_0 : i32, i32, i32
  }
  func.func @transform_1(%arg0: i32) -> (i32, i32, i32) {
    %c0_i32 = arith.constant 0 : i32
    %c0_i32_0 = arith.constant 0 : i32
    %c0_i32_1 = arith.constant 0 : i32
    return %arg0, %c0_i32, %c0_i32_0 : i32, i32, i32
  }
  func.func @transform_2(%arg0: i32) -> (i32, i32) {
    %c0_i32 = arith.constant 0 : i32
    %c0_i32_0 = arith.constant 0 : i32
    %c0_i32_1 = arith.constant 0 : i32
    return %c0_i32, %c0_i32_0 : i32, i32
  }
  func.func @transform_3(%arg0: i32) -> (i32, i32) {
    %c0_i32 = arith.constant 0 : i32
    %c0_i32_0 = arith.constant 0 : i32
    %c0_i32_1 = arith.constant 0 : i32
    return %c0_i32, %c0_i32_0 : i32, i32
  }
  func.func @transform_4(%arg0: i32) -> (i32, i32) {
    %c0_i32 = arith.constant 0 : i32
    %c0_i32_0 = arith.constant 0 : i32
    %c0_i32_1 = arith.constant 0 : i32
    return %c0_i32, %c0_i32_0 : i32, i32
  }
  func.func @transform_5(%arg0: i32) -> (i32, i32) {
    %c0_i32 = arith.constant 0 : i32
    %c0_i32_0 = arith.constant 0 : i32
    %c0_i32_1 = arith.constant 0 : i32
    return %c0_i32, %c0_i32_0 : i32, i32
  }
  func.func @transform_6(%arg0: i32) -> (i32, i32) {
    %c0_i32 = arith.constant 0 : i32
    %c0_i32_0 = arith.constant 0 : i32
    %c0_i32_1 = arith.constant 0 : i32
    return %c0_i32, %c0_i32_0 : i32, i32
  }
  func.func @transform_7(%arg0: i32) -> (i32, i32) {
    %c0_i32 = arith.constant 0 : i32
    %c0_i32_0 = arith.constant 0 : i32
    %c0_i32_1 = arith.constant 0 : i32
    return %c0_i32, %c0_i32_0 : i32, i32
  }
  func.func @transform_8(%arg0: i32) -> (i32, i32) {
    %c0_i32 = arith.constant 0 : i32
    %c0_i32_0 = arith.constant 0 : i32
    %c0_i32_1 = arith.constant 0 : i32
    return %c0_i32, %c0_i32_0 : i32, i32
  }
  func.func @transform_9(%arg0: i32) -> (i32, i32) {
    %c0_i32 = arith.constant 0 : i32
    %c0_i32_0 = arith.constant 0 : i32
    %c0_i32_1 = arith.constant 0 : i32
    return %c0_i32, %c0_i32_0 : i32, i32
  }
  func.func @transform_10(%arg0: i32) -> (i32, i32) {
    %c0_i32 = arith.constant 0 : i32
    %c0_i32_0 = arith.constant 0 : i32
    %c0_i32_1 = arith.constant 0 : i32
    return %c0_i32, %c0_i32_0 : i32, i32
  }
  func.func @transform_11(%arg0: i32) -> (i32, i32) {
    %c0_i32 = arith.constant 0 : i32
    %c0_i32_0 = arith.constant 0 : i32
    %c0_i32_1 = arith.constant 0 : i32
    return %c0_i32, %c0_i32_0 : i32, i32
  }
  func.func @transform_12(%arg0: i32) -> (i32, i32) {
    %c0_i32 = arith.constant 0 : i32
    %c0_i32_0 = arith.constant 0 : i32
    %c0_i32_1 = arith.constant 0 : i32
    return %c0_i32, %c0_i32_0 : i32, i32
  }
  func.func @transform_13(%arg0: i32) -> (i32, i32) {
    %c0_i32 = arith.constant 0 : i32
    %c0_i32_0 = arith.constant 0 : i32
    %c0_i32_1 = arith.constant 0 : i32
    return %c0_i32, %c0_i32_0 : i32, i32
  }
  func.func @transform_14(%arg0: i32) -> (i32, i32) {
    %c0_i32 = arith.constant 0 : i32
    %c0_i32_0 = arith.constant 0 : i32
    %c0_i32_1 = arith.constant 0 : i32
    return %c0_i32, %c0_i32_0 : i32, i32
  }
  func.func @transform_15(%arg0: i32) -> (i32, i32) {
    %c0_i32 = arith.constant 0 : i32
    %c0_i32_0 = arith.constant 0 : i32
    %c0_i32_1 = arith.constant 0 : i32
    return %c0_i32, %c0_i32_0 : i32, i32
  }
  func.func @transform_16(%arg0: i32) -> (i32, i32) {
    %c0_i32 = arith.constant 0 : i32
    %c0_i32_0 = arith.constant 0 : i32
    %c0_i32_1 = arith.constant 0 : i32
    return %c0_i32, %c0_i32_0 : i32, i32
  }
  func.func @transform_17(%arg0: i32) -> (i32, i32) {
    %c0_i32 = arith.constant 0 : i32
    %c0_i32_0 = arith.constant 0 : i32
    %c0_i32_1 = arith.constant 0 : i32
    return %c0_i32, %c0_i32_0 : i32, i32
  }
  func.func @transform_18(%arg0: i32) -> (i32, i32) {
    %c0_i32 = arith.constant 0 : i32
    %c0_i32_0 = arith.constant 0 : i32
    %c0_i32_1 = arith.constant 0 : i32
    return %c0_i32, %c0_i32_0 : i32, i32
  }
  func.func @transform_19(%arg0: i32) -> (i32, i32) {
    %c0_i32 = arith.constant 0 : i32
    %c0_i32_0 = arith.constant 0 : i32
    %c0_i32_1 = arith.constant 0 : i32
    return %c0_i32, %c0_i32_0 : i32, i32
  }
  func.func @transform_20(%arg0: i32) -> (i32, i32) {
    %c0_i32 = arith.constant 0 : i32
    %c0_i32_0 = arith.constant 0 : i32
    %c0_i32_1 = arith.constant 0 : i32
    return %c0_i32, %c0_i32_0 : i32, i32
  }
  func.func @transform_21(%arg0: i32) -> (i32, i32) {
    %c0_i32 = arith.constant 0 : i32
    %c0_i32_0 = arith.constant 0 : i32
    %c0_i32_1 = arith.constant 0 : i32
    return %c0_i32, %c0_i32_0 : i32, i32
  }
  func.func @transform_22(%arg0: i32) -> (i32, i32) {
    %c0_i32 = arith.constant 0 : i32
    %c0_i32_0 = arith.constant 0 : i32
    %c0_i32_1 = arith.constant 0 : i32
    return %c0_i32, %c0_i32_0 : i32, i32
  }
  func.func @transform_23(%arg0: i32) -> (i32, i32, i32) {
    %c0_i32 = arith.constant 0 : i32
    %c0_i32_0 = arith.constant 0 : i32
    %c0_i32_1 = arith.constant 0 : i32
    return %arg0, %c0_i32, %c0_i32_0 : i32, i32, i32
  }
  func.func @transform_24(%arg0: i32) -> (i32, i32, i32) {
    %c0_i32 = arith.constant 0 : i32
    %c0_i32_0 = arith.constant 0 : i32
    %c0_i32_1 = arith.constant 0 : i32
    return %arg0, %c0_i32, %c0_i32_0 : i32, i32, i32
  }
}

</mosaic_0001>

<bundles_post_ra>
// kernel: shas_forward.1
= control target key start
LH: loop header
LB: loop body
LE: loop exit
PB: predicated region body
PF: predicated region fallthrough
CT: control target
= control target key end

     0   :  { %s4228_s0 = inlined_call_operand.vmem [shape: f32[2,8,320], index: 0, kind: input, shape index: {}]   ;;  %s4229_s1 = inlined_call_operand.vmem [shape: f32[2,1,8], index: 1, kind: input, shape index: {}]   ;;  %s4230_s2 = inlined_call_operand.vmem [shape: bf16[320,64], index: 2, kind: input, shape index: {}]   ;;  %s4231_s3 = inlined_call_operand.vmem [shape: f32[1,64], index: 3, kind: input, shape index: {}]   ;;  %s4232_s4 = inlined_call_operand.vmem [shape: bf16[64,16], index: 4, kind: input, shape index: {}]   ;;  %s4233_s5 = inlined_call_operand.vmem [shape: f32[1,16], index: 5, kind: input, shape index: {}]   ;;  %s4234_s6 = inlined_call_operand.vmem [shape: f32[1,64], index: 6, kind: input, shape index: {}]   ;;  %s4235_s7 = inlined_call_operand.vmem [shape: f32[1,64], index: 7, kind: input, shape index: {}]   ;;  %s4236_s8 = inlined_call_operand.vmem [shape: bf16[64,128], index: 8, kind: input, shape index: {}]   ;;  %s4237_s9 = inlined_call_operand.vmem [shape: f32[1,128], index: 9, kind: input, shape index: {}]   ;;  %s4238_s10 = inlined_call_operand.vmem [shape: bf16[64,512], index: 10, kind: input, shape index: {}]   ;;  %s4239_s11 = inlined_call_operand.vmem [shape: f32[1,512], index: 11, kind: input, shape index: {}]   ;;  %s4240_s12 = inlined_call_operand.vmem [shape: f32[1,64], index: 12, kind: input, shape index: {}]   ;;  %s4241_s13 = inlined_call_operand.vmem [shape: f32[1,64], index: 13, kind: input, shape index: {}]   ;;  %s4242_s14 = inlined_call_operand.vmem [shape: f32[1,64], index: 14, kind: input, shape index: {}]   ;;  %s4243_s15 = inlined_call_operand.vmem [shape: bf16[64,256], index: 15, kind: input, shape index: {}]   ;;  %s4244_s16 = inlined_call_operand.vmem [shape: f32[1,256], index: 16, kind: input, shape index: {}]   ;;  %s4245_s17 = inlined_call_operand.vmem [shape: bf16[256,64], index: 17, kind: input, shape index: {}]   ;;  %s4246_s18 = inlined_call_operand.vmem [shape: f32[1,64], index: 18, kind: input, shape index: {}]   ;;  %s4247_s19 = inlined_call_operand.vmem [shape: f32[1,64], index: 19, kind: input, shape index: {}]   ;;  %s4248_s20 = inlined_call_operand.vmem [shape: f32[1,64], index: 20, kind: input, shape index: {}]   ;;  %s4249_s21 = inlined_call_operand.vmem [shape: f32[1,64], index: 21, kind: input, shape index: {}]   ;;  %s4250_s22 = inlined_call_operand.<no memory space> [shape: f32[1,1], index: 22, kind: input, shape index: {}]   ;;  %s4251_s23 = inlined_call_operand.hbm [shape: f32[2,8,16], index: 23, kind: output, shape index: {0}]   ;;  %s4252_s24 = inlined_call_operand.hbm [shape: f32[2,1,8], index: 24, kind: output, shape index: {1}]  }
   0x1   :  { %4265 = sst [smem:[#allocation15_spill]] %s4228_s0  ;;  %v30_v0 = vstv %s4250_s22 }
   0x2   :  { %4266 = sst [smem:[#allocation16_spill]] %s4229_s1  ;;  %31 = vst [vmem:[#allocation2] sm:$0x1] %v30_v0 }
   0x3   :  { %4267 = sst [smem:[#allocation17_spill]] %s4230_s2 }
   0x4   :  { %4268 = sst [smem:[#allocation18_spill]] %s4231_s3 }
   0x5   :  { %4269 = sst [smem:[#allocation19_spill]] %s4232_s4 }
   0x6   :  { %4270 = sst [smem:[#allocation20_spill]] %s4233_s5 }
   0x7   :  { %4271 = sst [smem:[#allocation21_spill]] %s4234_s6 }
   0x8   :  { %4272 = sst [smem:[#allocation22_spill]] %s4235_s7 }
   0x9   :  { %4273 = sst [smem:[#allocation23_spill]] %s4236_s8 }
   0xa   :  { %4274 = sst [smem:[#allocation24_spill]] %s4252_s24 }
   0xb   :  { %32 = vsyncpa [#allocation4], 0 }
   0xc   :  { %34 = vsyncpa [#allocation4 + $0x1], 0 }
   0xd   :  { %35 = vsyncpa [#allocation6], 0 }
   0xe   :  { %37 = vsyncpa [#allocation6 + $0x1], 0  ;;  %s3623_s27 = smov 0   ;;  %s3625_s28 = smov 0  }
   0xf   :  { %s3627_s6 = smov 0   ;;  %s3629_s2 = smov 0  }
  0x10 LB: > { %4275 = sst [smem:[#allocation9_spill]] %s3460_s27  ;;  %s3644_s22 = sadd.s32 4294967295, %s3472_s2   ;;  %s3472_s2 = sphi %s3629_s2, %s4296_s2   ;;  %s3468_s6 = sphi %s3627_s6, %s4298_s6   ;;  %s3464_s28 = sphi %s3625_s28, %s4300_s28   ;;  %s3460_s27 = sphi %s3623_s27, %s4299_s27  }
  0x11   : > { %4276 = sst [smem:[#allocation10_spill]] %s3468_s6  ;;  %s2853_s29 = sadd.s32 4294967294, %s3472_s2  }
  0x12   : > { %4277 = sst [smem:[#allocation11_spill]] %s3472_s2  ;;  %s3648_s0 = sadd.s32 1, %s3472_s2  }
  0x13   : > { %4278 = sst [smem:[#allocation12_spill]] %s3648_s0  ;;  %s543_s7 = sadd.s32 1, %s3468_s6 }
  0x14   : > { %s540_s30 = ssub.s32 %s3472_s2, %s3648_s0  ;;  %p553_p0 = scmp.ne.s32.totalorder %s3468_s6, %s3464_s28 }
  0x15   : > { %p541_p1 = scmp.eq.s32.totalorder %s540_s30, 0  ;;  %p554_p2 = scmp.eq.s32.totalorder %s3644_s22, 1 }
  0x16   : > { %p559_p3 = scmp.ne.s32.totalorder %s3464_s28, %s3460_s27  ;;  %p560_p4 = scmp.eq.s32.totalorder %s2853_s29, 1 }
  0x17   : > { %s3659_s3 = scalar_select %p541_p1, %s3468_s6, %s543_s7  }
  0x18   : > { %p3661_p5 = por %p554_p2, %p553_p0  ;;  %p3665_p6 = por %p560_p4, %p559_p3 }
  0x19   : > { %4279 = sst [smem:[#allocation13_spill]] %s3659_s3  ;;  %p2856_p7 = scmp.ge.s32.totalorder %s3472_s2, 1 }
  0x1a   : > { %s4281_s8 = scalar_select %p3665_p6, 1, 0 }
  0x1b   : > { %p681_p8 = scmp.lt.s32.totalorder %s3472_s2, 3 }
  0x1c   : > { %4282 = sst [smem:[#allocation14_spill]] %s4281_s8 }
  0x1d   : > { %p682_p9 = pnand %p2856_p7, %p681_p8 }
  0x1e   : > { %s4283_s5 = sld [smem:[#allocation17_spill]] (!%p682_p9)  ;;  %v3474_v3 = vmov (!%p682_p9), 0.0   ;;  %p754_p10 = scmp.lt.s32.totalorder (!%p682_p9), %s3644_s22, 1  ;;  %vm3475_vm0 = vmmov (!%p682_p9), 0   ;;  %vm936_vm1 = vcmask (!%p682_p9), 523264   ;;  %vm1112_vm2 = vcmask (!%p682_p9), 130048  }
  0x1f   : > { %685 = sbr.rel (%p682_p9) target bundleno = 2899 (0xb53), region = 112  ;;  %3057 = vmatprep.subr.bf16.mxu1 (!%p682_p9), %v3474_v3  ;;  %3065 = vmatprep.mubr.msk.bf16.mxu1 (!%p682_p9), %vm3475_vm0, %v3474_v3  ;;  %s4284_s24 = sld [smem:[#allocation15_spill]] (!%p682_p9)  ;;  %v3281_v61 = vld [vmem:[%s4238_s10 + $0x4] ss:$16 sps:$4 sm:$0xff] (!%p682_p9)   ;;  %v3279_v62 = vld [vmem:[%s4238_s10] ss:$16 sps:$4 sm:$0xff] (!%p682_p9)  }
  0x20   : > { %s4286_s30 = sld [smem:[#allocation18_spill]] (!%p682_p9)  ;;  %s4287_s1 = sld [smem:[#allocation23_spill]] (!%p682_p9)  ;;  %v3285_v0 = vld [vmem:[%s4238_s10 + $0x24] ss:$16 sps:$4 sm:$0xff] (!%p682_p9)   ;;  %vm1504_vm3 = vcmask (!%p682_p9), 1043456   ;;  %vm1444_vm4 = vcmask (!%p682_p9), 64512  }
  0x21   : > { %s3825_s2 = sand.u32 (!%p682_p9), 1, %s3464_s28   ;;  %s4288_s3 = sld [smem:[#allocation20_spill]] (!%p682_p9) }
  0x22   : > { %s3479_s29 = smov (!%p682_p9), 24   ;;  %s3483_s26 = smov (!%p682_p9), 8  }
  0x23   : > { %s3484_s0 = smov (!%p682_p9), 112   ;;  %s3486_s27 = smov (!%p682_p9), 104  }
  0x24   : > { %v3254_v1 = vld [vmem:[%s4283_s5 + $0x40] sm:$0xff] (!%p682_p9)   ;;  %v3256_v4 = vld [vmem:[%s4283_s5 + $0x48] sm:$0xff] (!%p682_p9)   ;;  %v3258_v6 = vld [vmem:[%s4283_s5 + $0x50] sm:$0xff] (!%p682_p9)  }
  0x25   : > { %v3255_v2 = vld [vmem:[%s4283_s5] sm:$0xff] (!%p682_p9)   ;;  %2966 = vmatprep.subr.bf16.mxu0 (!%p682_p9), %v3254_v1  ;;  %v3257_v5 = vld [vmem:[%s4283_s5 + $0x8] sm:$0xff] (!%p682_p9)   ;;  %v3259_v7 = vld [vmem:[%s4283_s5 + $0x10] sm:$0xff] (!%p682_p9)  }
  0x26   : > { %2967 = vmatpush3.bf16.msra.mxu0 %v3255_v2  ;;  %v3260_v8 = vld [vmem:[%s4283_s5 + $0x58] sm:$0xff]   ;;  %s3697_s6 = scalar_select %p754_p10, %s3644_s22, 1  ;;  %v3264_v9 = vld [vmem:[%s4283_s5 + $0x80] sm:$0xff]   ;;  %v3267_v12 = vld [vmem:[%s4283_s5 + $0x88] sm:$0xff]  }
  0x27   : > { %2968 = vmatprep.subr.bf16.mxu0 %v3256_v4  ;;  %v3261_v10 = vld [vmem:[%s4283_s5 + $0x18] sm:$0xff]   ;;  %v3262_v11 = vld [vmem:[%s4283_s5 + $0x60] sm:$0xff]   ;;  %3058 = vmatpush3.bf16.msra.mxu1 %v3264_v9  ;;  %v3265_v14 = vld [vmem:[%s4283_s5 + $0x68] sm:$0xff]  }
  0x28   : > { %s3189_s7 = smul.u32 24, %s3697_s6  ;;  %3059 = vmatprep.subr.bf16.mxu1 %v3474_v3  ;;  %v3263_v13 = vld [vmem:[%s4283_s5 + $0x20] sm:$0xff]   ;;  %v3270_v15 = vld [vmem:[%s4283_s5 + $0x90] sm:$0xff]   ;;  %v3266_v16 = vld [vmem:[%s4283_s5 + $0x28] sm:$0xff]  }
  0x29   : > { %v3268_v17 = vld [vmem:[%s4283_s5 + $0x70] sm:$0xff]   ;;  %v3273_v21 = vld [vmem:[%s4283_s5 + $0x98] sm:$0xff]   ;;  %v2859_v38 = vld [vmem:[%s4286_s30] ss:$0 sm:$0xff]  ;;  %s4290_s30 = sld [smem:[#allocation22_spill]] }
  0x2a   : > { %2969 = vmatpush3.bf16.msra.mxu0 %v3257_v5  ;;  %s758_s8 = scalar_lea.vmem %s4284_s24, %s3189_s7  ;;  %v3269_v22 = vld [vmem:[%s4283_s5 + $0x30] sm:$0xff]   ;;  %v3271_v23 = vld [vmem:[%s4283_s5 + $0x78] sm:$0xff]   ;;  %v3278_v60 = vld [vmem:[%s4287_s1] sm:$0xff]   ;;  %s2857_s7 = sshll.u32 %s3825_s2, 3 }
  0x2b   : > { %2970 = vmatprep.subr.bf16.mxu0 %v3258_v6  ;;  %3060 = vmatpush3.bf16.msra.mxu1 %v3267_v12  ;;  %v764_v18 = vld [vmem:[%s758_s8 + $0x8] sm:$0xff]  ;;  %v765_v19 = vld [vmem:[%s758_s8 + $0x10] sm:$0xff]  ;;  %v3272_v25 = vld [vmem:[%s4283_s5 + $0x38] sm:$0xff]   ;;  %s3831_s4 = scalar_lea.vmem [#allocation3], %s2857_s7  ;;  %s4289_s24 = sld [smem:[#allocation21_spill]] }
  0x2c   : > { %3061 = vmatprep.subr.bf16.mxu1 %v3474_v3  ;;  %v767_v20 = vpack.c.bf16 %v764_v18, %v764_v18  ;;  %v768_v24 = vpack.c.bf16 %v765_v19, %v765_v19  ;;  %v763_v26 = vld [vmem:[%s758_s8] sm:$0xff]  ;;  %s4285_s8 = sld [smem:[#allocation19_spill]]  ;;  %v3282_v63 = vld [vmem:[%s4287_s1 + $0x8] sm:$0xff]   ;;  %v3286_v2 = vld [vmem:[%s4287_s1 + $0x10] sm:$0xff]   ;;  %s3477_s5 = smov 120  }
  0x2d   : > { %v766_v27 = vpack.c.bf16 %v763_v26, %v763_v26  ;;  %v3283_v1 = vld [vmem:[%s4238_s10 + $0x20] ss:$16 sps:$4 sm:$0xff]   ;;  %v3289_v4 = vld [vmem:[%s4238_s10 + $0x44] ss:$16 sps:$4 sm:$0xff]   ;;  %v3290_v6 = vld [vmem:[%s4287_s1 + $0x18] sm:$0xff]   ;;  %s3478_s1 = smov 64  }
  0x2e   : > { %2971 = vmatpush3.bf16.msra.mxu0 %v3259_v7  ;;  %972 = vmatprep.mubr.bf16.mxu0 %v767_v20  ;;  %v3287_v5 = vld [vmem:[%s4238_s10 + $0x40] ss:$16 sps:$4 sm:$0xff]   ;;  %v3293_v7 = vld [vmem:[%s4238_s10 + $0x64] ss:$16 sps:$4 sm:$0xff]   ;;  %v3296_v9 = vld [vmem:[%s4238_s10 + $0xc] ss:$16 sps:$4 sm:$0xff]  }
  0x2f   : > { %2972 = vmatprep.subr.bf16.mxu0 %v3260_v8  ;;  %3062 = vmatpush3.bf16.msra.mxu1 %v3270_v15  ;;  %v3291_v8 = vld [vmem:[%s4238_s10 + $0x60] ss:$16 sps:$4 sm:$0xff]   ;;  %v3294_v26 = vld [vmem:[%s4238_s10 + $0x8] ss:$16 sps:$4 sm:$0xff]   ;;  %s3481_s7 = smov 16  }
  0x30   : > { %3063 = vmatprep.subr.bf16.mxu1 %v3474_v3 }
  0x32   : > { %2973 = vmatpush3.bf16.msra.mxu0 %v3261_v10  ;;  %v3274_v28 = vld [vmem:[%s4285_s8] sm:$0xff]   ;;  %v3275_v29 = vld [vmem:[%s4285_s8 + $0x8] sm:$0xff]   ;;  %v3276_v30 = vld [vmem:[%s4285_s8 + $0x10] sm:$0xff]   ;;  %v3476_v10 = vmov 0  }
  0x33   : > { %2974 = vmatprep.subr.bf16.mxu0 %v3262_v11  ;;  %3064 = vmatpush3.bf16.msra.mxu1 %v3273_v21  ;;  %v3277_v31 = vld [vmem:[%s4285_s8 + $0x18] sm:$0xff]   ;;  %v2881_v11 = vld [vmem:[%s4288_s3] ss:$0 sm:$0xff]  ;;  %s3482_s3 = smov 48  }
  0x34   : > { %3069 = vmatprep.subr.bf16.mxu1 %v3474_v3  ;;  %3253 = vset.pattern.permute.xlu0 %v3476_v10  ;;  %v2887_v21 = vld [vmem:[%s4289_s24] ss:$0 sm:$0xff]  ;;  %s3485_s24 = smov 40  }
  0x36   : > { %2975 = vmatpush3.bf16.msra.mxu0 %v3263_v13  ;;  %3066 = vmatmul.mubr.msk.bf16.vlgmr.msra.gmra.mrb[0].mxu1 %vm936_vm1, %v768_v24 }
  0x37   : > { %2976 = vmatprep.subr.bf16.mxu0 %v3265_v14  ;;  %3077 = vmatprep.mubr.msk.bf16.mxu1 %vm3475_vm0, %v3474_v3 }
  0x38   : > { %3070 = vmatpush3.bf16.msra.mxu1 %v3274_v28  ;;  %v3299_v28 = vld [vmem:[%s4238_s10 + $0x2c] ss:$16 sps:$4 sm:$0xff]  }
  0x39   : > { %3071 = vmatprep.subr.bf16.mxu1 %v3474_v3 }
  0x3a   : > { %2977 = vmatpush3.bf16.msra.mxu0 %v3266_v16 }
  0x3b   : > { %2978 = vmatprep.subr.bf16.mxu0 %v3268_v17 }
  0x3c   : > { %3072 = vmatpush3.bf16.msra.mxu1 %v3275_v29  ;;  %v3297_v29 = vld [vmem:[%s4238_s10 + $0x28] ss:$16 sps:$4 sm:$0xff]  }
  0x3d   : > { %3073 = vmatprep.subr.bf16.mxu1 %v3474_v3 }
  0x3e   : > { %2979 = vmatpush3.bf16.msra.mxu0 %v3269_v22 }
  0x3f   : > { %2980 = vmatprep.subr.bf16.mxu0 %v3271_v23  ;;  %v2888_v23 = vld [vmem:[%s4290_s30] ss:$0 sm:$0xff]  ;;  %s3480_s30 = smov 56  }
  0x40   : > { %3074 = vmatpush3.bf16.msra.mxu1 %v3276_v30  ;;  %v3302_v30 = vld [vmem:[%s4238_s10 + $0x4c] ss:$16 sps:$4 sm:$0xff]  }
  0x41   : > { %3075 = vmatprep.subr.bf16.mxu1 %v3474_v3 }
  0x42   : > { %2981 = vmatpush3.bf16.msra.mxu0 %v3272_v25 }
  0x43   : > { %3081 = vmatprep.subr.bf16.mxu0 %v3474_v3 }
  0x44   : > { %3076 = vmatpush3.bf16.msra.mxu1 %v3277_v31  ;;  %v3300_v31 = vld [vmem:[%s4238_s10 + $0x48] ss:$16 sps:$4 sm:$0xff]  }
  0x45   : > { %973 = vmatmul.mubr.bf16.vlgmr.msra.gmra.mrb[0].mxu0 %v766_v27  ;;  %1349 = vmatprep.subr.bf16.mxu1 %v3281_v61 }
  0x46   : > { %3089 = vmatprep.mubr.msk.bf16.mxu0 %vm3475_vm0, %v3474_v3  ;;  %3082 = vmatpush3.bf16.msra.mxu0 %v3278_v60 }
  0x47   : > { %3083 = vmatprep.subr.bf16.mxu0 %v3474_v3 }
  0x4a   : > { %3084 = vmatpush3.bf16.msra.mxu0 %v3282_v63 }
  0x4b   : > { %3085 = vmatprep.subr.bf16.mxu0 %v3474_v3 }
  0x4e   : > { %3086 = vmatpush3.bf16.msra.mxu0 %v3286_v2 }
  0x4f   : > { %3087 = vmatprep.subr.bf16.mxu0 %v3474_v3 }
  0x52   : > { %3088 = vmatpush3.bf16.msra.mxu0 %v3290_v6 }
  0x53   : > { %1390 = vmatprep.subr.bf16.mxu0 %v3296_v9 }
 0x109   : > { %v1014_v32 = vpop.f32.mrb[0].mxu1 }
 0x10a   : > { %v3067_v33 = vpop.f32.mrb[1].mxu1 }
 0x10b   : > { %v1017_v34 = vpop.f32.mrb[2].mxu1  ;;  %v3303_v33 = vld [vmem:[%s4238_s10 + $0x68] ss:$16 sps:$4 sm:$0xff]  }
 0x10c   : > { %v3068_v35 = vpop.f32.mrb[3].mxu1  ;;  %v1249_v34 = vlaneseq }
 0x10e   : > { %v3871_v35 = vshrl.u32 %v1249_v34, 7 }
 0x118   : > { %v2982_v36 = vpop.f32.mrb[0].mxu0 }
 0x119   : > { %v2983_v37 = vpop.f32.mrb[1].mxu0 }
 0x11a   : > { %v2984_v39 = vadd.f32 %v2983_v37, %v2982_v36  ;;  %v2985_v40 = vpop.f32.mrb[2].mxu0  ;;  %v3874_v36 = vsub.s32 0, %v3871_v35  ;;  %v1247_v37 = vld [vmem:[%s4239_s11] sm:$0xf] }
 0x11b   : > { %v2986_v41 = vpop.f32.mrb[3].mxu0  ;;  %v2889_v40 = vld [vmem:[%s4237_s9] ss:$0 sm:$0xff] }
 0x11c   : > { %v975_v42 = vadd.f32 %v2984_v39, %v2859_v38  ;;  %v1255_v38 = vsub.s32 1, %v3871_v35  ;;  %v1252_v39 = vrot.slane %v1247_v37, %v3874_v36 }
 0x11e   : > { %v1015_v43 = vadd.f32 %v1014_v32, %v975_v42  ;;  %v3305_v32 = vld [vmem:[%s4238_s10 + $0x6c] ss:$16 sps:$4 sm:$0xff]   ;;  %v1256_v41 = vrot.slane %v1247_v37, %v1255_v38 }
 0x120   : > { %v1021_v44 = vmul.f32 0.044715, %v1015_v43  ;;  %v1020_v50 = vmul.f32 0.5, %v1015_v43 }
 0x122   : > { %v1022_v45 = vmul.f32 %v1021_v44, %v1015_v43 }
 0x124   : > { %v1023_v46 = vmul.f32 %v1022_v45, %v1015_v43 }
 0x126   : > { %v1024_v47 = vadd.f32 %v1023_v46, %v1015_v43 }
 0x128   : > { %v1025_v48 = vmul.f32 0.7978846, %v1024_v47 }
 0x12a   : > { %3334 = vtanh.f32 %v1025_v48 }
 0x134   : > { %v3335_v49 = vpop.eup %3334 }
 0x135   : > { %v1027_v51 = vadd.f32 1.0, %v3335_v49 }
 0x137   : > { %v3770_v52 = vmul.f32 %v1027_v51, %v1020_v50 }
 0x139   : > { %v1119_v53 = vsel %vm936_vm1, %v3770_v52, 0.0  ;;  %v1029_v54 = vpack.c.bf16 %v3770_v52, %v3770_v52 }
 0x13a   : > { %1120 = vadd.xlane.f32.xlu0 %v1119_v53 }
 0x13b   : > { %3078 = vmatmul.mubr.msk.bf16.vlgmr.msra.gmra.mrb[4].mxu1 %vm936_vm1, %v1029_v54 }
 0x13c   : > { %1350 = vmatpush1.bf16.msra.mxu1 %v3279_v62  ;;  %1381 = vmatprep.mubr.bf16.mxu1 %v3476_v10 }
 0x13d   : > { %1351 = vmatprep.subr.bf16.mxu1 %v3285_v0 }
 0x140   : > { %1352 = vmatpush1.bf16.msra.mxu1 %v3283_v1 }
 0x141   : > { %1353 = vmatprep.subr.bf16.mxu1 %v3289_v4 }
 0x144   : > { %1354 = vmatpush1.bf16.msra.mxu1 %v3287_v5 }
 0x145   : > { %1355 = vmatprep.subr.bf16.mxu1 %v3293_v7 }
 0x148   : > { %1356 = vmatpush1.bf16.msra.mxu1 %v3291_v8 }
 0x149   : > { %3099 = vmatprep.subr.bf16.mxu1 %v3474_v3 }
 0x1c7   : > { %v1121_v55 = vpop.xlane.xlu0 %1120 }
 0x1c8   : > { %v1123_v56 = vmul.f32 0.015625, %v1121_v55 }
 0x1ca   : > { %v1124_v57 = vsub.f32 %v3770_v52, %v1123_v56 }
 0x1cc   : > { %v1125_v58 = vmul.f32 %v1124_v57, %v1124_v57 }
 0x1ce   : > { %v1126_v59 = vsel %vm936_vm1, %v1125_v58, 0.0  ;;  %v1263_v58 = vsub.s32 3, %v3871_v35 }
 0x1cf   : > { %1127 = vadd.xlane.f32.xlu0 %v1126_v59 }
 0x1d0   : > { %v1264_v60 = vrot.slane %v1247_v37, %v1263_v58 }
 0x20e   : > { %v1106_v12 = vpop.f32.mrb[4].mxu1 }
 0x20f   : > { %v1107_v13 = vadd.f32 %v2881_v11, %v1106_v12  ;;  %v3079_v14 = vpop.f32.mrb[5].mxu1 }
 0x210   : > { %v1109_v15 = vpop.f32.mrb[6].mxu1 }
 0x211   : > { %v3080_v16 = vpop.f32.mrb[7].mxu1  ;;  %1113 = vst.msk [vmem:[%s3831_s4] sm:$0xff] %vm1112_vm2, %v1107_v13 }
 0x25c   : > { %v1128_v17 = vpop.xlane.xlu0 %1127 }
 0x25d   : > { %v1129_v18 = vmul.f32 0.015625, %v1128_v17 }
 0x25f   : > { %v1130_v19 = vadd.f32 1e-05, %v1129_v18 }
 0x261   : > { %3336 = vrsqrt.f32 %v1130_v19 }
 0x26b   : > { %v3337_v20 = vpop.eup %3336 }
 0x26c   : > { %v1132_v22 = vmul.f32 %v3337_v20, %v1124_v57  ;;  %v1259_v57 = vsub.s32 2, %v3871_v35 }
 0x26e   : > { %v1139_v24 = vmul.f32 %v2887_v21, %v1132_v22  ;;  %v1260_v59 = vrot.slane %v1247_v37, %v1259_v57 }
 0x270   : > { %v1146_v25 = vadd.f32 %v2888_v23, %v1139_v24 }
 0x272   : > { %v1147_v27 = vpack.c.bf16 %v1146_v25, %v1146_v25 }
 0x274   : > { %3090 = vmatmul.mubr.msk.bf16.vlgmr.msra.gmra.mrb[4].mxu0 %vm936_vm1, %v1147_v27  ;;  %2911 = vmatmul.mubr.msk.bf16.vlgmr.msra.gmra.mrb[8].mxu1 %vm936_vm1, %v1147_v27 }
 0x275   : > { %1391 = vmatpush1.bf16.msra.mxu0 %v3294_v26  ;;  %1422 = vmatprep.mubr.bf16.mxu0 %v3476_v10 }
 0x276   : > { %1392 = vmatprep.subr.bf16.mxu0 %v3299_v28  ;;  %3101 = vmatprep.mubr.msk.bf16.mxu1 %vm3475_vm0, %v3474_v3 }
 0x279   : > { %1393 = vmatpush1.bf16.msra.mxu0 %v3297_v29  ;;  %v3492_v29 = vmov -1e+09  }
 0x27a   : > { %1394 = vmatprep.subr.bf16.mxu0 %v3302_v30 }
 0x27d   : > { %1395 = vmatpush1.bf16.msra.mxu0 %v3300_v31 }
 0x27e   : > { %1396 = vmatprep.subr.bf16.mxu0 %v3305_v32 }
 0x281   : > { %1397 = vmatpush1.bf16.msra.mxu0 %v3303_v33 }
 0x282   : > { %3093 = vmatprep.subr.bf16.mxu0 %v3474_v3 }
 0x284   : > { %2912 = vmatmul.mubr.msk.bf16.vlgmr.msra.gmra.mrb[8].mxu0 %vm936_vm1, %v1147_v27 }
 0x285   : > { %3095 = vmatprep.mubr.msk.bf16.mxu0 %vm3475_vm0, %v3474_v3 }
 0x347   : > { %v1224_v42 = vpop.f32.mrb[4].mxu0  ;;  %v1383_v43 = vpop.f32.mrb[8].mxu1 }
 0x348   : > { %v1225_v44 = vadd.f32 %v2889_v40, %v1224_v42  ;;  %v1384_v45 = vadd.f32 %v1383_v43, %v1252_v39  ;;  %v3091_v46 = vpop.f32.mrb[5].mxu0  ;;  %v1385_v47 = vpop.f32.mrb[9].mxu1 }
 0x349   : > { %v3886_v48 = vadd.f32 %v1385_v47, %v1256_v41  ;;  %v1227_v49 = vpop.f32.mrb[6].mxu0  ;;  %v1387_v50 = vpop.f32.mrb[10].mxu1 }
 0x34a   : > { %v1230_v51 = vpack.c.bf16 %v1225_v44, %v1225_v44  ;;  %v3888_v53 = vpack.c.bf16 %v1384_v45, %v1384_v45  ;;  %v3092_v54 = vpop.f32.mrb[7].mxu0  ;;  %v1388_v55 = vpop.f32.mrb[11].mxu1 }
 0x34c   : > { %v1506_v56 = vsel %vm1504_vm3, %v3888_v53, 0  ;;  %1551 = vrot.lane.b32.xlu0 %v1230_v51, %s3477_s5  ;;  %1442 = vrot.lane.b32.xlu1 %v1230_v51, %s3478_s1  ;;  %s3487_s5 = smov 32  }
 0x34d   : > { %3100 = vmatpush3.bf16.msra.mxu1 %v1506_v56 }
 0x34e   : > { %3111 = vmatprep.subr.bf16.mxu1 %v3474_v3 }
 0x350   : > { %1995 = vrot.lane.b32.xlu0 %v1230_v51, %s3479_s29  ;;  %1553 = vrot.lane.b32.xlu1 %v1230_v51, %s3480_s30  ;;  %s3488_s29 = smov 96   ;;  %s3489_s30 = smov 88  }
 0x354   : > { %2107 = vrot.lane.b32.xlu0 %v1230_v51, %s3481_s7  ;;  %1665 = vrot.lane.b32.xlu1 %v1230_v51, %s3482_s3  ;;  %s3490_s7 = smov 80   ;;  %s3491_s3 = smov 72  }
 0x357   : > { %v1424_v61 = vpop.f32.mrb[8].mxu0 }
 0x358   : > { %v3896_v62 = vadd.f32 %v1424_v61, %v1260_v59  ;;  %v1426_v63 = vpop.f32.mrb[9].mxu0  ;;  %2216 = vrot.lane.b32.xlu0 %v1230_v51, %s3483_s26  ;;  %1663 = vrot.lane.b32.xlu1 %v1230_v51, %s3484_s0 }
 0x359   : > { %v3898_v0 = vadd.f32 %v1426_v63, %v1264_v60  ;;  %v1428_v1 = vpop.f32.mrb[10].mxu0  ;;  %v3956_v60 = vpack.c.bf16 %v3886_v48, %v3886_v48 }
 0x35a   : > { %v1429_v2 = vpop.f32.mrb[11].mxu0 }
 0x35c   : > { %1774 = vrot.lane.b32.xlu1 %v1230_v51, %s3485_s24  ;;  %s4291_s24 = sld [smem:[#allocation16_spill]] }
 0x360   : > { %1772 = vrot.lane.b32.xlu1 %v1230_v51, %s3486_s27 }
 0x362   : > { %s761_s27 = scalar_lea.vmem %s4291_s24, %s3697_s6  ;;  %s2962_s24 = sshll.u32 %s3644_s22, 7 }
 0x363   : > { %v1114_v28 = vld [vmem:[%s761_s27] sm:$0x1] }
 0x364   : > { %1886 = vrot.lane.b32.xlu1 %v1230_v51, %s3487_s5  ;;  %vm1115_vm5 = vcmp.gt.f32.partialorder %v1114_v28, 0.0  ;;  %s2744_s5 = sshll.u32 %s3831_s4, 4  ;;  %s2745_s5 = int_to_ptr.vmem [resolvable:$true] %s2744_s5 }
 0x365   : > { %v1116_v30 = vsel %vm1115_vm5, 0.0, %v3492_v29 }
 0x366   : > { %v1439_v31 = vrot.slane %v1116_v30, %v3874_v36 }
 0x368   : > { %1884 = vrot.lane.b32.xlu1 %v1230_v51, %s3488_s29  ;;  %s2727_s29 = scalar_lea.sflag [#allocation4], %s3825_s2 }
 0x36c   : > { %1993 = vrot.lane.b32.xlu1 %v1230_v51, %s3489_s30  ;;  %s3378_s30 = scalar_lea.vmem %s2745_s5, 128 }
 0x36d   : > { %p3379_p11 = scmp.ne.s32.totalorder %s2745_s5, %s3378_s30 }
 0x36f   : > { %p3380_p12 = pnand %p3379_p11, %p3661_p5 }
 0x370   : > { %2105 = vrot.lane.b32.xlu1 %v1230_v51, %s3490_s7  ;;  %s3493_s7 = smov [#allocation3]  }
 0x371   : > { %p3381_p13 = pneg %p3380_p12 }
 0x374   : > { %2214 = vrot.lane.b32.xlu1 %v1230_v51, %s3491_s3  ;;  %s3382_s3 = sshll.u32 %s3493_s7, 4  ;;  %s3383_s3 = int_to_ptr.vmem [resolvable:$false] %s3382_s3 }
 0x375   : > { %s3384_s26 = scalar_lea.vmem %s3383_s3, 256  ;;  %p3385_p0 = scmp.lt.s32.totalorder %s2745_s5, %s3383_s3 }
 0x376   : > { %p3386_p1 = scmp.lt.s32.totalorder %s3384_s26, %s3378_s30 }
 0x378   : > { %p3387_p2 = por %p3386_p1, %p3385_p0 }
 0x37a   : > { %p3388_p3 = pnand %p3387_p2, %p3381_p13 }
 0x3be   : > { %v1443_v4 = vpop.permute.xlu1 %1442  ;;  %v1552_v11 = vpop.permute.xlu0 %1551 }
 0x3bf   : > { %v1449_v5 = vsel %vm1444_vm4, %v1443_v4, 0 }
 0x3c0   : > { %3094 = vmatpush3.bf16.xpose.msra.mxu0 %v1449_v5 }
 0x3c1   : > { %3105 = vmatprep.subr.bf16.mxu0 %v3474_v3 }
 0x3c2   : > { %v1554_v6 = vpop.permute.xlu1 %1553  ;;  %v1996_v18 = vpop.permute.xlu0 %1995 }
 0x3c3   : > { %v1559_v8 = vsel %vm1444_vm4, %v1554_v6, 0  ;;  %v2001_v20 = vsel %vm1444_vm4, %v1996_v18, 0 }
 0x3c6   : > { %v1666_v7 = vpop.permute.xlu1 %1665  ;;  %v2108_v21 = vpop.permute.xlu0 %2107 }
 0x3c7   : > { %3096 = vmatmul.mubr.msk.bf16.vlgmr.msra.gmra.mrb[12].mxu0 %vm1444_vm4, %v1230_v51  ;;  %v1671_v12 = vsel %vm1444_vm4, %v1666_v7, 0  ;;  %v2113_v23 = vsel %vm1444_vm4, %v2108_v21, 0 }
 0x3c8   : > { %3106 = vmatpush3.bf16.xpose.msra.mxu0 %v1559_v8  ;;  %3107 = vmatprep.mubr.msk.bf16.mxu0 %vm3475_vm0, %v3474_v3 }
 0x3c9   : > { %3117 = vmatprep.subr.bf16.mxu0 %v3474_v3 }
 0x3ca   : > { %v1664_v9 = vpop.permute.xlu1 %1663  ;;  %v2217_v24 = vpop.permute.xlu0 %2216 }
 0x3cb   : > { %v2222_v26 = vsel %vm1444_vm4, %v2217_v24, 0 }
 0x3ce   : > { %v1775_v13 = vpop.permute.xlu1 %1774 }
 0x3cf   : > { %3108 = vmatmul.mubr.msk.bf16.vlgmr.msra.gmra.mrb[16].mxu0 %vm1444_vm4, %v1552_v11  ;;  %v1780_v15 = vsel %vm1444_vm4, %v1775_v13, 0 }
 0x3d0   : > { %3118 = vmatpush3.bf16.xpose.msra.mxu0 %v1671_v12  ;;  %3119 = vmatprep.mubr.msk.bf16.mxu0 %vm3475_vm0, %v3474_v3 }
 0x3d1   : > { %3129 = vmatprep.subr.bf16.mxu0 %v3474_v3 }
 0x3d2   : > { %v1773_v14 = vpop.permute.xlu1 %1772 }
 0x3d6   : > { %v1887_v16 = vpop.permute.xlu1 %1886 }
 0x3d7   : > { %3120 = vmatmul.mubr.msk.bf16.vlgmr.msra.gmra.mrb[20].mxu0 %vm1444_vm4, %v1664_v9  ;;  %v1892_v17 = vsel %vm1444_vm4, %v1887_v16, 0 }
 0x3d8   : > { %3130 = vmatpush3.bf16.xpose.msra.mxu0 %v1780_v15  ;;  %3131 = vmatprep.mubr.msk.bf16.mxu0 %vm3475_vm0, %v3474_v3 }
 0x3d9   : > { %3141 = vmatprep.subr.bf16.mxu0 %v3474_v3 }
 0x3da   : > { %v1885_v19 = vpop.permute.xlu1 %1884 }
 0x3de   : > { %v1994_v22 = vpop.permute.xlu1 %1993 }
 0x3df   : > { %3132 = vmatmul.mubr.msk.bf16.vlgmr.msra.gmra.mrb[24].mxu0 %vm1444_vm4, %v1773_v14 }
 0x3e0   : > { %3142 = vmatpush3.bf16.xpose.msra.mxu0 %v1892_v17  ;;  %3143 = vmatprep.mubr.msk.bf16.mxu0 %vm3475_vm0, %v3474_v3 }
 0x3e1   : > { %3153 = vmatprep.subr.bf16.mxu0 %v3474_v3 }
 0x3e2   : > { %v2106_v25 = vpop.permute.xlu1 %2105 }
 0x3e6   : > { %v2215_v27 = vpop.permute.xlu1 %2214 }
 0x3e7   : > { %3144 = vmatmul.mubr.msk.bf16.vlgmr.msra.gmra.mrb[28].mxu0 %vm1444_vm4, %v1885_v19 }
 0x3e8   : > { %3154 = vmatpush3.bf16.xpose.msra.mxu0 %v2001_v20  ;;  %3155 = vmatprep.mubr.msk.bf16.mxu0 %vm3475_vm0, %v3474_v3 }
 0x3e9   : > { %3165 = vmatprep.subr.bf16.mxu0 %v3474_v3 }
 0x3ef   : > { %3156 = vmatmul.mubr.msk.bf16.vlgmr.msra.gmra.mrb[32].mxu0 %vm1444_vm4, %v1994_v22 }
 0x3f0   : > { %3166 = vmatpush3.bf16.xpose.msra.mxu0 %v2113_v23  ;;  %3167 = vmatprep.mubr.msk.bf16.mxu0 %vm3475_vm0, %v3474_v3 }
 0x3f1   : > { %3177 = vmatprep.subr.bf16.mxu0 %v3474_v3 }
 0x3f7   : > { %3168 = vmatmul.mubr.msk.bf16.vlgmr.msra.gmra.mrb[36].mxu0 %vm1444_vm4, %v2106_v25  ;;  %v1433_v25 = vpack.c.bf16 %v3896_v62, %v3896_v62 }
 0x3f8   : > { %3178 = vmatpush3.bf16.xpose.msra.mxu0 %v2222_v26  ;;  %3179 = vmatprep.mubr.msk.bf16.mxu0 %vm3475_vm0, %v3474_v3  ;;  %v3985_v26 = vpack.c.bf16 %v3898_v0, %v3898_v0 }
 0x3ff   : > { %3180 = vmatmul.mubr.msk.bf16.vlgmr.msra.gmra.mrb[40].mxu0 %vm1444_vm4, %v2215_v27 }
 0x400   : > { %2460 = vmatprep.mubr.bf16.mxu0 %v3476_v10 }
 0x49a   : > { %v1485_v32 = vpop.f32.mrb[12].mxu0 }
 0x49b   : > { %v3943_v33 = vadd.f32 %v1485_v32, %v1439_v31  ;;  %v3097_v37 = vpop.f32.mrb[13].mxu0 }
 0x49c   : > { %v1488_v39 = vpop.f32.mrb[14].mxu0 }
 0x49d   : > { %v3098_v40 = vpop.f32.mrb[15].mxu0  ;;  %v1491_v41 = vsel %vm1444_vm4, %v3943_v33, -inf }
 0x49e   : > { %1492 = vmax.xlane.f32.xlu0 %v1491_v41 }
 0x4a2   : > { %v1595_v10 = vpop.f32.mrb[16].mxu0 }
 0x4a3   : > { %v1596_v42 = vadd.f32 %v1595_v10, %v1439_v31  ;;  %v3109_v43 = vpop.f32.mrb[17].mxu0 }
 0x4a4   : > { %v1598_v44 = vpop.f32.mrb[18].mxu0 }
 0x4a5   : > { %v3110_v45 = vpop.f32.mrb[19].mxu0  ;;  %v1601_v46 = vsel %vm1444_vm4, %v1596_v42, -inf }
 0x4a6   : > { %1602 = vmax.xlane.f32.xlu1 %v1601_v46 }
 0x4aa   : > { %v1707_v47 = vpop.f32.mrb[20].mxu0 }
 0x4ab   : > { %v3948_v49 = vadd.f32 %v1707_v47, %v1439_v31  ;;  %v3121_v50 = vpop.f32.mrb[21].mxu0 }
 0x4ac   : > { %v1710_v51 = vpop.f32.mrb[22].mxu0 }
 0x4ad   : > { %v3122_v54 = vpop.f32.mrb[23].mxu0  ;;  %v1713_v55 = vsel %vm1444_vm4, %v3948_v49, -inf  ;;  %v1727_v51 = vsel %vm1504_vm3, %v3956_v60, 0 }
 0x4ae   : > { %1714 = vmax.xlane.f32.xlu0 %v1713_v55 }
 0x4b2   : > { %v1816_v56 = vpop.f32.mrb[24].mxu0 }
 0x4b3   : > { %v3952_v57 = vadd.f32 %v1816_v56, %v1439_v31  ;;  %v3133_v58 = vpop.f32.mrb[25].mxu0 }
 0x4b4   : > { %v1819_v59 = vpop.f32.mrb[26].mxu0 }
 0x4b5   : > { %v3134_v61 = vpop.f32.mrb[27].mxu0  ;;  %v1822_v63 = vsel %vm1444_vm4, %v3952_v57, -inf }
 0x4b6   : > { %1823 = vmax.xlane.f32.xlu0 %v1822_v63 }
 0x4b7   : > { %1833 = vrot.lane.b32.xlu1 %v3956_v60, %s3478_s1  ;;  %v1948_v60 = vsel %vm1504_vm3, %v1433_v25, 0 }
 0x4ba   : > { %v1928_v1 = vpop.f32.mrb[28].mxu0 }
 0x4bb   : > { %v3962_v2 = vadd.f32 %v1928_v1, %v1439_v31  ;;  %v3145_v4 = vpop.f32.mrb[29].mxu0 }
 0x4bc   : > { %v1931_v5 = vpop.f32.mrb[30].mxu0 }
 0x4bd   : > { %v3146_v6 = vpop.f32.mrb[31].mxu0  ;;  %v1934_v22 = vsel %vm1444_vm4, %v3962_v2, -inf }
 0x4c2   : > { %v2037_v7 = vpop.f32.mrb[32].mxu0 }
 0x4c3   : > { %v3964_v8 = vadd.f32 %v2037_v7, %v1439_v31  ;;  %v3157_v9 = vpop.f32.mrb[33].mxu0 }
 0x4c4   : > { %v2040_v48 = vpop.f32.mrb[34].mxu0 }
 0x4c5   : > { %v3158_v11 = vpop.f32.mrb[35].mxu0  ;;  %v2043_v23 = vsel %vm1444_vm4, %v3964_v8, -inf }
 0x4ca   : > { %v2149_v12 = vpop.f32.mrb[36].mxu0 }
 0x4cb   : > { %v3966_v13 = vadd.f32 %v2149_v12, %v1439_v31  ;;  %v3169_v14 = vpop.f32.mrb[37].mxu0 }
 0x4cc   : > { %v2152_v15 = vpop.f32.mrb[38].mxu0  ;;  %1612 = vrot.lane.b32.xlu0 %v3888_v53, %s3478_s1 }
 0x4cd   : > { %v3170_v16 = vpop.f32.mrb[39].mxu0  ;;  %v2155_v24 = vsel %vm1444_vm4, %v3966_v13, -inf }
 0x4d2   : > { %v2258_v17 = vpop.f32.mrb[40].mxu0 }
 0x4d3   : > { %v3970_v18 = vadd.f32 %v2258_v17, %v1439_v31  ;;  %v3181_v19 = vpop.f32.mrb[41].mxu0 }
 0x4d4   : > { %v2261_v20 = vpop.f32.mrb[42].mxu0 }
 0x4d5   : > { %v3182_v21 = vpop.f32.mrb[43].mxu0  ;;  %v2264_v53 = vsel %vm1444_vm4, %v3970_v18, -inf }
 0x4db   : > { %1935 = vmax.xlane.f32.xlu1 %v1934_v22  ;;  %v2169_v22 = vsel %vm1504_vm3, %v3985_v26, 0 }
 0x4df   : > { %2044 = vmax.xlane.f32.xlu1 %v2043_v23 }
 0x4e3   : > { %2156 = vmax.xlane.f32.xlu1 %v2155_v24 }
 0x4eb   : > { %2265 = vmax.xlane.f32.xlu0 %v2264_v53 }
 0x4f4   : > { %2054 = vrot.lane.b32.xlu1 %v1433_v25, %s3478_s1 }
 0x4f8   : > { %2275 = vrot.lane.b32.xlu1 %v3985_v26, %s3478_s1  ;;  %s4156_s1 = scalar_lea.hbm %s4251_s23, %s2962_s24 }
 0x52b   : > { %v1493_v27 = vpop.xlane.xlu0 %1492 }
 0x52c   : > { %v1494_v28 = vsub.f32 %v3943_v33, %v1493_v27 }
 0x52e   : > { %v1495_v29 = vmul.f32 1.442695, %v1494_v28 }
 0x530   : > { %3338 = vpow2.f32 %v1495_v29 }
 0x533   : > { %v1603_v30 = vpop.xlane.xlu1 %1602 }
 0x534   : > { %v1604_v31 = vsub.f32 %v1596_v42, %v1603_v30 }
 0x536   : > { %v1605_v32 = vmul.f32 1.442695, %v1604_v31 }
 0x537   : > { %v1834_v54 = vpop.permute.xlu1 %1833 }
 0x538   : > { %3340 = vpow2.f32 %v1605_v32  ;;  %v1839_v58 = vsel %vm1504_vm3, %v1834_v54, 0 }
 0x53a   : > { %v3339_v37 = vpop.eup %3338 }
 0x53b   : > { %v1715_v62 = vpop.xlane.xlu0 %1714  ;;  %v1497_v39 = vsel %vm1444_vm4, %v3339_v37, 0.0  ;;  %v1500_v40 = vpack.c.bf16 %v3339_v37, %v3339_v37 }
 0x53c   : > { %v1716_v0 = vsub.f32 %v3948_v49, %v1715_v62  ;;  %1498 = vadd.xlane.f32.xlu1 %v1497_v39 }
 0x53d   : > { %3102 = vmatmul.mubr.msk.bf16.vlgmr.msra.gmra.mrb[12].mxu1 %vm1444_vm4, %v1500_v40 }
 0x53e   : > { %v1717_v41 = vmul.f32 1.442695, %v1716_v0  ;;  %3113 = vmatprep.mubr.msk.bf16.mxu1 %vm3475_vm0, %v3474_v3 }
 0x540   : > { %3342 = vpow2.f32 %v1717_v41 }
 0x542   : > { %v3341_v33 = vpop.eup %3340 }
 0x543   : > { %v1824_v10 = vpop.xlane.xlu0 %1823  ;;  %v1607_v42 = vsel %vm1444_vm4, %v3341_v33, 0.0  ;;  %v1610_v49 = vpack.c.bf16 %v3341_v33, %v3341_v33 }
 0x544   : > { %v1825_v43 = vsub.f32 %v3952_v57, %v1824_v10  ;;  %1608 = vadd.xlane.f32.xlu0 %v1607_v42 }
 0x546   : > { %v1826_v44 = vmul.f32 1.442695, %v1825_v43 }
 0x547   : > { %v1613_v45 = vpop.permute.xlu0 %1612 }
 0x548   : > { %3344 = vpow2.f32 %v1826_v44  ;;  %v1618_v46 = vsel %vm1504_vm3, %v1613_v45, 0 }
 0x549   : > { %3112 = vmatpush3.bf16.msra.mxu1 %v1618_v46 }
 0x54a   : > { %v3343_v47 = vpop.eup %3342  ;;  %3123 = vmatprep.subr.bf16.mxu1 %v3474_v3 }
 0x54b   : > { %v1719_v50 = vsel %vm1444_vm4, %v3343_v47, 0.0  ;;  %v1722_v56 = vpack.c.bf16 %v3343_v47, %v3343_v47 }
 0x54c   : > { %1720 = vadd.xlane.f32.xlu0 %v1719_v50  ;;  %3114 = vmatmul.mubr.msk.bf16.vlgmr.msra.gmra.mrb[16].mxu1 %vm1444_vm4, %v1610_v49 }
 0x54d   : > { %3124 = vmatpush3.bf16.msra.mxu1 %v1727_v51  ;;  %3125 = vmatprep.mubr.msk.bf16.mxu1 %vm3475_vm0, %v3474_v3 }
 0x54e   : > { %3135 = vmatprep.subr.bf16.mxu1 %v3474_v3 }
 0x552   : > { %v3345_v55 = vpop.eup %3344 }
 0x553   : > { %v1828_v57 = vsel %vm1444_vm4, %v3345_v55, 0.0  ;;  %v1831_v59 = vpack.c.bf16 %v3345_v55, %v3345_v55 }
 0x554   : > { %1829 = vadd.xlane.f32.xlu0 %v1828_v57  ;;  %3126 = vmatmul.mubr.msk.bf16.vlgmr.msra.gmra.mrb[20].mxu1 %vm1444_vm4, %v1722_v56 }
 0x555   : > { %3136 = vmatpush3.bf16.msra.mxu1 %v1839_v58  ;;  %3137 = vmatprep.mubr.msk.bf16.mxu1 %vm3475_vm0, %v3474_v3 }
 0x556   : > { %3147 = vmatprep.subr.bf16.mxu1 %v3474_v3 }
 0x55c   : > { %3138 = vmatmul.mubr.msk.bf16.vlgmr.msra.gmra.mrb[24].mxu1 %vm1444_vm4, %v1831_v59 }
 0x55d   : > { %3148 = vmatpush3.bf16.msra.mxu1 %v1948_v60  ;;  %3149 = vmatprep.mubr.msk.bf16.mxu1 %vm3475_vm0, %v3474_v3 }
 0x55e   : > { %3159 = vmatprep.subr.bf16.mxu1 %v3474_v3 }
 0x568   : > { %v1936_v61 = vpop.xlane.xlu1 %1935 }
 0x569   : > { %v1937_v63 = vsub.f32 %v3962_v2, %v1936_v61 }
 0x56b   : > { %v1938_v1 = vmul.f32 1.442695, %v1937_v63 }
 0x56c   : > { %v2045_v4 = vpop.xlane.xlu1 %2044 }
 0x56d   : > { %3346 = vpow2.f32 %v1938_v1  ;;  %v2046_v5 = vsub.f32 %v3964_v8, %v2045_v4 }
 0x56f   : > { %v2047_v6 = vmul.f32 1.442695, %v2046_v5 }
 0x570   : > { %v2157_v7 = vpop.xlane.xlu1 %2156 }
 0x571   : > { %3348 = vpow2.f32 %v2047_v6  ;;  %v2158_v9 = vsub.f32 %v3966_v13, %v2157_v7 }
 0x573   : > { %v2159_v48 = vmul.f32 1.442695, %v2158_v9 }
 0x574   : > { %v2055_v12 = vpop.permute.xlu1 %2054 }
 0x575   : > { %3350 = vpow2.f32 %v2159_v48  ;;  %v2060_v17 = vsel %vm1504_vm3, %v2055_v12, 0 }
 0x577   : > { %v3347_v11 = vpop.eup %3346 }
 0x578   : > { %v2266_v14 = vpop.xlane.xlu0 %2265  ;;  %v1940_v15 = vsel %vm1444_vm4, %v3347_v11, 0.0  ;;  %v1943_v16 = vpack.c.bf16 %v3347_v11, %v3347_v11  ;;  %v2276_v24 = vpop.permute.xlu1 %2275 }
 0x579   : > { %v2267_v2 = vsub.f32 %v3970_v18, %v2266_v14  ;;  %1941 = vadd.xlane.f32.xlu0 %v1940_v15  ;;  %v2281_v27 = vsel %vm1504_vm3, %v2276_v24, 0 }
 0x57a   : > { %3150 = vmatmul.mubr.msk.bf16.vlgmr.msra.gmra.mrb[28].mxu1 %vm1444_vm4, %v1943_v16 }
 0x57b   : > { %v3349_v8 = vpop.eup %3348  ;;  %v2268_v19 = vmul.f32 1.442695, %v2267_v2  ;;  %3160 = vmatpush3.bf16.msra.mxu1 %v2060_v17  ;;  %3161 = vmatprep.mubr.msk.bf16.mxu1 %vm3475_vm0, %v3474_v3 }
 0x57c   : > { %v2049_v13 = vsel %vm1444_vm4, %v3349_v8, 0.0  ;;  %3171 = vmatprep.subr.bf16.mxu1 %v3474_v3  ;;  %v2052_v21 = vpack.c.bf16 %v3349_v8, %v3349_v8 }
 0x57d   : > { %3352 = vpow2.f32 %v2268_v19  ;;  %2050 = vadd.xlane.f32.xlu0 %v2049_v13 }
 0x57f   : > { %v3351_v20 = vpop.eup %3350 }
 0x580   : > { %v2161_v18 = vsel %vm1444_vm4, %v3351_v20, 0.0  ;;  %v2164_v25 = vpack.c.bf16 %v3351_v20, %v3351_v20 }
 0x581   : > { %2162 = vadd.xlane.f32.xlu1 %v2161_v18 }
 0x582   : > { %3162 = vmatmul.mubr.msk.bf16.vlgmr.msra.gmra.mrb[32].mxu1 %vm1444_vm4, %v2052_v21 }
 0x583   : > { %3172 = vmatpush3.bf16.msra.mxu1 %v2169_v22  ;;  %3173 = vmatprep.mubr.msk.bf16.mxu1 %vm3475_vm0, %v3474_v3 }
 0x584   : > { %3183 = vmatprep.subr.bf16.mxu1 %v3474_v3 }
 0x587   : > { %v3353_v23 = vpop.eup %3352 }
 0x588   : > { %v2270_v53 = vsel %vm1444_vm4, %v3353_v23, 0.0  ;;  %v2273_v26 = vpack.c.bf16 %v3353_v23, %v3353_v23 }
 0x589   : > { %2271 = vadd.xlane.f32.xlu0 %v2270_v53 }
 0x58a   : > { %3174 = vmatmul.mubr.msk.bf16.vlgmr.msra.gmra.mrb[36].mxu1 %vm1444_vm4, %v2164_v25 }
 0x58b   : > { %3184 = vmatpush3.bf16.msra.mxu1 %v2281_v27  ;;  %3185 = vmatprep.mubr.msk.bf16.mxu1 %vm3475_vm0, %v3474_v3 }
 0x592   : > { %3186 = vmatmul.mubr.msk.bf16.vlgmr.msra.gmra.mrb[40].mxu1 %vm1444_vm4, %v2273_v26 }
 0x5c9   : > { %v1499_v29 = vpop.xlane.xlu1 %1498 }
 0x5ca   : > { %3354 = vrcp.f32 %v1499_v29 }
 0x5d1   : > { %v1609_v31 = vpop.xlane.xlu0 %1608 }
 0x5d2   : > { %3356 = vrcp.f32 %v1609_v31 }
 0x5d4   : > { %v3355_v39 = vpop.eup %3354 }
 0x5d9   : > { %v1721_v62 = vpop.xlane.xlu0 %1720 }
 0x5da   : > { %3358 = vrcp.f32 %v1721_v62 }
 0x5dc   : > { %v3357_v40 = vpop.eup %3356 }
 0x5e1   : > { %v1830_v42 = vpop.xlane.xlu0 %1829 }
 0x5e2   : > { %3360 = vrcp.f32 %v1830_v42  ;;  %v3311_v42 = vld [vmem:[%s4243_s15 + $0x14] ss:$8 sps:$4 sm:$0xff]  }
 0x5e4   : > { %v3359_v45 = vpop.eup %3358 }
 0x5ec   : > { %v3361_v55 = vpop.eup %3360 }
 0x606   : > { %v1942_v63 = vpop.xlane.xlu0 %1941 }
 0x607   : > { %3362 = vrcp.f32 %v1942_v63  ;;  %v3319_v63 = vld [vmem:[%s4245_s17] sm:$0xff]  }
 0x60a   : > { %v2051_v1 = vpop.xlane.xlu0 %2050 }
 0x60b   : > { %3364 = vrcp.f32 %v2051_v1  ;;  %v3320_v1 = vld [vmem:[%s4245_s17 + $0x48] sm:$0xff]  }
 0x60e   : > { %v2163_v48 = vpop.xlane.xlu1 %2162 }
 0x60f   : > { %3366 = vrcp.f32 %v2163_v48  ;;  %v3326_v48 = vld [vmem:[%s4245_s17 + $0x60] sm:$0xff]  }
 0x610   : > { %v1542_v28 = vpop.f32.mrb[12].mxu1 }
 0x611   : > { %v3103_v30 = vpop.f32.mrb[13].mxu1  ;;  %v1549_v41 = vmul.f32 %v3355_v39, %v1542_v28  ;;  %v3363_v4 = vpop.eup %3362 }
 0x612   : > { %v1545_v32 = vpop.f32.mrb[14].mxu1 }
 0x613   : > { %v3104_v37 = vpop.f32.mrb[15].mxu1  ;;  %v2929_v32 = vld [vmem:[%s4240_s12] ss:$0 sm:$0xff] }
 0x615   : > { %v3365_v14 = vpop.eup %3364 }
 0x616   : > { %v2272_v8 = vpop.xlane.xlu0 %2271 }
 0x617   : > { %3368 = vrcp.f32 %v2272_v8  ;;  %v2373_v8 = vld [vmem:[%s4244_s16] sm:$0x3] }
 0x619   : > { %v3367_v20 = vpop.eup %3366 }
 0x61f   : > { %v1654_v0 = vpop.f32.mrb[16].mxu1 }
 0x620   : > { %v1661_v33 = vmul.f32 %v3357_v40, %v1654_v0  ;;  %v3115_v10 = vpop.f32.mrb[17].mxu1 }
 0x621   : > { %v1657_v3 = vpop.f32.mrb[18].mxu1  ;;  %v3369_v25 = vpop.eup %3368 }
 0x622   : > { %v1662_v43 = vadd.f32 %v1661_v33, %v1549_v41  ;;  %v3116_v44 = vpop.f32.mrb[19].mxu1  ;;  %v3308_v3 = vld [vmem:[%s4243_s15 + $0x4] ss:$8 sps:$4 sm:$0xff]  }
 0x623   : > { %2428 = vmatprep.subr.bf16.mxu0 %v3308_v3  ;;  %v3314_v44 = vld [vmem:[%s4243_s15 + $0x24] ss:$8 sps:$4 sm:$0xff]  }
 0x627   : > { %v1763_v46 = vpop.f32.mrb[20].mxu1 }
 0x628   : > { %v1770_v47 = vmul.f32 %v3359_v45, %v1763_v46  ;;  %v3127_v49 = vpop.f32.mrb[21].mxu1  ;;  %v3312_v45 = vld [vmem:[%s4243_s15 + $0x20] ss:$8 sps:$4 sm:$0xff]   ;;  %v3317_v46 = vld [vmem:[%s4243_s15 + $0x34] ss:$8 sps:$4 sm:$0xff]  }
 0x629   : > { %v1766_v50 = vpop.f32.mrb[22].mxu1 }
 0x62a   : > { %v1771_v51 = vadd.f32 %v1770_v47, %v1662_v43  ;;  %v3128_v54 = vpop.f32.mrb[23].mxu1  ;;  %v3309_v43 = vld [vmem:[%s4243_s15 + $0x10] ss:$8 sps:$4 sm:$0xff]  }
 0x62b   : > { %v3315_v47 = vld [vmem:[%s4243_s15 + $0x30] ss:$8 sps:$4 sm:$0xff]  }
 0x62f   : > { %v1875_v56 = vpop.f32.mrb[24].mxu1 }
 0x630   : > { %v1882_v57 = vmul.f32 %v3361_v55, %v1875_v56  ;;  %v3139_v58 = vpop.f32.mrb[25].mxu1  ;;  %v2930_v55 = vld [vmem:[%s4241_s13] ss:$0 sm:$0xff] }
 0x631   : > { %v1878_v59 = vpop.f32.mrb[26].mxu1 }
 0x632   : > { %v1883_v60 = vadd.f32 %v1882_v57, %v1771_v51  ;;  %v3140_v61 = vpop.f32.mrb[27].mxu1  ;;  %v2931_v57 = vld [vmem:[%s4242_s14] ss:$0 sm:$0xff] }
 0x633   : > { %v3318_v61 = vld [vmem:[%s4245_s17 + $0x40] sm:$0xff]  }
 0x634   : > { %3035 = vmatprep.subr.bf16.mxu1 %v3318_v61 }
 0x635   : > { %3036 = vmatpush3.bf16.msra.mxu1 %v3319_v63 }
 0x636   : > { %3037 = vmatprep.subr.bf16.mxu1 %v3320_v1 }
 0x64d   : > { %v1984_v5 = vpop.f32.mrb[28].mxu1 }
 0x64e   : > { %v1991_v6 = vmul.f32 %v3363_v4, %v1984_v5  ;;  %v3151_v7 = vpop.f32.mrb[29].mxu1  ;;  %v3321_v4 = vld [vmem:[%s4245_s17 + $0x8] sm:$0xff]   ;;  %v3322_v5 = vld [vmem:[%s4245_s17 + $0x50] sm:$0xff]  }
 0x64f   : > { %v1987_v9 = vpop.f32.mrb[30].mxu1  ;;  %3038 = vmatpush3.bf16.msra.mxu1 %v3321_v4  ;;  %v3324_v7 = vld [vmem:[%s4245_s17 + $0x58] sm:$0xff]   ;;  %v2958_v4 = vld [vmem:[%s4247_s19] ss:$0 sm:$0xff] }
 0x650   : > { %v1992_v11 = vadd.f32 %v1991_v6, %v1883_v60  ;;  %v3152_v12 = vpop.f32.mrb[31].mxu1  ;;  %v3323_v6 = vld [vmem:[%s4245_s17 + $0x10] sm:$0xff]   ;;  %3039 = vmatprep.subr.bf16.mxu1 %v3322_v5  ;;  %v3325_v9 = vld [vmem:[%s4245_s17 + $0x18] sm:$0xff]  }
 0x651   : > { %v3328_v12 = vld [vmem:[%s4245_s17 + $0x68] sm:$0xff]  }
 0x653   : > { %3040 = vmatpush3.bf16.msra.mxu1 %v3323_v6  ;;  %v2959_v6 = vld [vmem:[%s4248_s20] ss:$0 sm:$0xff] }
 0x654   : > { %3041 = vmatprep.subr.bf16.mxu1 %v3324_v7 }
 0x655   : > { %v2096_v15 = vpop.f32.mrb[32].mxu1 }
 0x656   : > { %v2103_v16 = vmul.f32 %v3365_v14, %v2096_v15  ;;  %v3163_v2 = vpop.f32.mrb[33].mxu1  ;;  %v3329_v14 = vld [vmem:[%s4245_s17 + $0x28] sm:$0xff]   ;;  %v3330_v15 = vld [vmem:[%s4245_s17 + $0x70] sm:$0xff]  }
 0x657   : > { %v2099_v17 = vpop.f32.mrb[34].mxu1  ;;  %3042 = vmatpush3.bf16.msra.mxu1 %v3325_v9  ;;  %v3332_v2 = vld [vmem:[%s4245_s17 + $0x78] sm:$0xff]   ;;  %v2960_v9 = vld [vmem:[%s4249_s21] ss:$0 sm:$0xff] }
 0x658   : > { %v2104_v19 = vadd.f32 %v2103_v16, %v1992_v11  ;;  %v3164_v13 = vpop.f32.mrb[35].mxu1  ;;  %v3327_v11 = vld [vmem:[%s4245_s17 + $0x20] sm:$0xff]   ;;  %3043 = vmatprep.subr.bf16.mxu1 %v3326_v48  ;;  %v3331_v16 = vld [vmem:[%s4245_s17 + $0x30] sm:$0xff]   ;;  %v3333_v17 = vld [vmem:[%s4245_s17 + $0x38] sm:$0xff]  }
 0x659   : > { %v2382_v13 = vrot.slane %v2373_v8, %v1255_v38 }
 0x65b   : > { %3044 = vmatpush3.bf16.msra.mxu1 %v3327_v11 }
 0x65c   : > { %3045 = vmatprep.subr.bf16.mxu1 %v3328_v12 }
 0x65d   : > { %v2205_v18 = vpop.f32.mrb[36].mxu1 }
 0x65e   : > { %v2212_v21 = vmul.f32 %v3367_v20, %v2205_v18  ;;  %v3175_v22 = vpop.f32.mrb[37].mxu1 }
 0x65f   : > { %v2208_v23 = vpop.f32.mrb[38].mxu1  ;;  %3046 = vmatpush3.bf16.msra.mxu1 %v3329_v14 }
 0x660   : > { %v2213_v24 = vadd.f32 %v2212_v21, %v2104_v19  ;;  %v3176_v53 = vpop.f32.mrb[39].mxu1  ;;  %3047 = vmatprep.subr.bf16.mxu1 %v3330_v15  ;;  %v2378_v19 = vrot.slane %v2373_v8, %v3874_v36 }
 0x663   : > { %3048 = vmatpush3.bf16.msra.mxu1 %v3331_v16 }
 0x664   : > { %3049 = vmatprep.subr.bf16.mxu1 %v3332_v2 }
 0x665   : > { %v2317_v27 = vpop.f32.mrb[40].mxu1 }
 0x666   : > { %v2324_v26 = vmul.f32 %v3369_v25, %v2317_v27  ;;  %v3187_v28 = vpop.f32.mrb[41].mxu1 }
 0x667   : > { %v2320_v29 = vpop.f32.mrb[42].mxu1  ;;  %3050 = vmatpush3.bf16.msra.mxu1 %v3333_v17 }
 0x668   : > { %v2325_v30 = vadd.f32 %v2324_v26, %v2213_v24  ;;  %v3188_v31 = vpop.f32.mrb[43].mxu1 }
 0x66a   : > { %v2326_v37 = vadd.f32 %v2325_v30, %v3770_v52  ;;  %v3306_v52 = vld [vmem:[%s4243_s15] ss:$8 sps:$4 sm:$0xff]  }
 0x66b   : > { %2429 = vmatpush1.bf16.msra.mxu0 %v3306_v52 }
 0x66c   : > { %v4045_v62 = vadd.f32 %v2929_v32, %v2326_v37  ;;  %2430 = vmatprep.subr.bf16.mxu0 %v3311_v42 }
 0x66e   : > { %v2337_v39 = vsel %vm936_vm1, %v4045_v62, 0.0 }
 0x66f   : > { %2338 = vadd.xlane.f32.xlu1 %v2337_v39  ;;  %2431 = vmatpush1.bf16.msra.mxu0 %v3309_v43 }
 0x670   : > { %2432 = vmatprep.subr.bf16.mxu0 %v3314_v44  ;;  %v2941_v44 = vld [vmem:[%s4246_s18] ss:$0 sm:$0xff] }
 0x673   : > { %2433 = vmatpush1.bf16.msra.mxu0 %v3312_v45 }
 0x674   : > { %2434 = vmatprep.subr.bf16.mxu0 %v3317_v46 }
 0x677   : > { %2435 = vmatpush1.bf16.msra.mxu0 %v3315_v47 }
 0x6fc   : > { %v2339_v40 = vpop.xlane.xlu1 %2338 }
 0x6fd   : > { %v2340_v0 = vmul.f32 0.015625, %v2339_v40 }
 0x6ff   : > { %v2341_v41 = vsub.f32 %v4045_v62, %v2340_v0 }
 0x701   : > { %v2342_v33 = vmul.f32 %v2341_v41, %v2341_v41 }
 0x703   : > { %v2343_v10 = vsel %vm936_vm1, %v2342_v33, 0.0 }
 0x704   : > { %2344 = vadd.xlane.f32.xlu0 %v2343_v10 }
 0x791   : > { %v2345_v49 = vpop.xlane.xlu0 %2344 }
 0x792   : > { %v2346_v50 = vmul.f32 0.015625, %v2345_v49 }
 0x794   : > { %v2347_v51 = vadd.f32 1e-05, %v2346_v50 }
 0x796   : > { %3370 = vrsqrt.f32 %v2347_v51 }
 0x7a0   : > { %v3371_v54 = vpop.eup %3370 }
 0x7a1   : > { %v2349_v56 = vmul.f32 %v3371_v54, %v2341_v41 }
 0x7a3   : > { %v2356_v58 = vmul.f32 %v2930_v55, %v2349_v56 }
 0x7a5   : > { %v2363_v59 = vadd.f32 %v2931_v57, %v2356_v58 }
 0x7a7   : > { %v2364_v60 = vpack.c.bf16 %v2363_v59, %v2363_v59 }
 0x7a9   : > { %2940 = vmatmul.mubr.msk.bf16.vlgmr.msra.gmra.mrb[44].mxu0 %vm936_vm1, %v2364_v60  ;;  %v2705_v60 = vld [vmem:[#allocation2] sm:$0x1] }
 0x87c   : > { %v2462_v20 = vpop.f32.mrb[44].mxu0 }
 0x87d   : > { %v2463_v18 = vadd.f32 %v2462_v20, %v2378_v19  ;;  %v2464_v21 = vpop.f32.mrb[45].mxu0 }
 0x87e   : > { %v2465_v22 = vadd.f32 %v2464_v21, %v2382_v13  ;;  %v2466_v23 = vpop.f32.mrb[46].mxu0 }
 0x87f   : > { %v2471_v24 = vmul.f32 0.044715, %v2463_v18  ;;  %v2467_v53 = vpop.f32.mrb[47].mxu0  ;;  %v2469_v40 = vmul.f32 0.5, %v2463_v18 }
 0x880   : > { %v2472_v25 = vmul.f32 0.044715, %v2465_v22  ;;  %v2470_v41 = vmul.f32 0.5, %v2465_v22 }
 0x881   : > { %v2473_v27 = vmul.f32 %v2471_v24, %v2463_v18 }
 0x882   : > { %v2474_v26 = vmul.f32 %v2472_v25, %v2465_v22 }
 0x883   : > { %v2475_v28 = vmul.f32 %v2473_v27, %v2463_v18 }
 0x884   : > { %v2476_v29 = vmul.f32 %v2474_v26, %v2465_v22 }
 0x885   : > { %v2477_v30 = vadd.f32 %v2475_v28, %v2463_v18 }
 0x886   : > { %v2478_v31 = vadd.f32 %v2476_v29, %v2465_v22 }
 0x887   : > { %v2479_v32 = vmul.f32 0.7978846, %v2477_v30 }
 0x888   : > { %v2480_v37 = vmul.f32 0.7978846, %v2478_v31 }
 0x889   : > { %3372 = vtanh.f32 %v2479_v32 }
 0x88a   : > { %3374 = vtanh.f32 %v2480_v37 }
 0x893   : > { %v3373_v39 = vpop.eup %3372 }
 0x894   : > { %v3375_v38 = vpop.eup %3374  ;;  %v2483_v0 = vadd.f32 1.0, %v3373_v39 }
 0x895   : > { %v2484_v33 = vadd.f32 1.0, %v3375_v38 }
 0x896   : > { %v2485_v10 = vmul.f32 %v2483_v0, %v2469_v40 }
 0x897   : > { %v2486_v3 = vmul.f32 %v2484_v33, %v2470_v41 }
 0x898   : > { %v2487_v42 = vpack.c.bf16 %v2485_v10, %v2485_v10 }
 0x899   : > { %v2488_v52 = vpack.c.bf16 %v2486_v3, %v2486_v3 }
 0x89b   : > { %2656 = vmatprep.mubr.bf16.mxu1 %v2488_v52 }
 0x89c   : > { %2657 = vmatmul.mubr.bf16.vlgmr.msra.gmra.mrb[44].mxu1 %v2487_v42 }
 0x96f   : > { %v3051_v43 = vpop.f32.mrb[44].mxu1 }
 0x970   : > { %v3052_v45 = vpop.f32.mrb[45].mxu1 }
 0x971   : > { %v3053_v46 = vadd.f32 %v3052_v45, %v3051_v43  ;;  %v3054_v47 = vpop.f32.mrb[46].mxu1 }
 0x972   : > { %v3055_v49 = vpop.f32.mrb[47].mxu1 }
 0x973   : > { %v2659_v50 = vadd.f32 %v3053_v46, %v2941_v44 }
 0x975   : > { %v2664_v51 = vadd.f32 %v2659_v50, %v4045_v62 }
 0x977   : > { %v2667_v54 = vsel %vm936_vm1, %v2664_v51, 0.0 }
 0x978   : > { %2668 = vadd.xlane.f32.xlu1 %v2667_v54 }
 0xa05   : > { %v2669_v55 = vpop.xlane.xlu1 %2668 }
 0xa06   : > { %v2670_v56 = vmul.f32 0.015625, %v2669_v55 }
 0xa08   : > { %v2671_v57 = vsub.f32 %v2664_v51, %v2670_v56 }
 0xa0a   : > { %v2672_v58 = vmul.f32 %v2671_v57, %v2671_v57 }
 0xa0c   : > { %v2673_v59 = vsel %vm936_vm1, %v2672_v58, 0.0 }
 0xa0d   : > { %2674 = vadd.xlane.f32.xlu0 %v2673_v59 }
 0xa23   : > { %2708 = vperm.xlu0 %3253, %v2705_v60  }
 0xa9a   : > { %v2675_v61 = vpop.xlane.xlu0 %2674 }
 0xa9b   : > { %v2676_v63 = vmul.f32 0.015625, %v2675_v61 }
 0xa9d   : > { %v2677_v1 = vadd.f32 1e-05, %v2676_v63 }
 0xa9f   : > { %3376 = vrsqrt.f32 %v2677_v1 }
 0xaa9   : > { %v3377_v62 = vpop.eup %3376 }
 0xaaa   : > { %v2679_v5 = vmul.f32 %v3377_v62, %v2671_v57 }
 0xaac   : > { %v2686_v7 = vmul.f32 %v2958_v4, %v2679_v5 }
 0xaae   : > { %v2693_v48 = vadd.f32 %v2959_v6, %v2686_v7 }
 0xab0   : > { %v2701_v11 = vmul.f32 %v2960_v9, %v2693_v48 }
 0xab2   : > { %v2702_v12 = vsel %vm936_vm1, %v2701_v11, 0.0 }
 0xab3   : > { %2703 = vadd.xlane.f32.xlu1 %v2702_v12 }
 0xab4   : > { %3391 = shalt.err (!%p3388_p3)
}
 0xab5   : > { %s3392_s4 = scalar_lea.hbm %s4156_s1, 128  ;;  %s3396_s27 = scalar_lea.hbm %s4251_s23, 256 }
 0xab6   : > { %p3393_p4 = scmp.ne.s32.totalorder %s4156_s1, %s3392_s4  ;;  %p3397_p9 = scmp.lt.u32.totalorder %s4156_s1, %s4251_s23 }
 0xab7   : > { %p3398_p10 = scmp.lt.u32.totalorder %s3396_s27, %s3392_s4  ;;  %p3400_p12 = scmp.lt.u32.totalorder %s3392_s4, %s4156_s1 }
 0xab8   : > { %p3394_p7 = pnand %p3393_p4, %p3661_p5 }
 0xab9   : > { %p3399_p11 = por %p3398_p10, %p3397_p9 }
 0xaba   : > { %p3395_p8 = pneg %p3394_p7 }
 0xabb   : > { %p3401_p13 = por %p3400_p12, %p3399_p11 }
 0xabd   : > { %p3402_p0 = pnand %p3401_p13, %p3395_p8 }
 0xabf   : > { %3405 = shalt.err (!%p3402_p0)
}
 0xac0   : > { %3190 = dma.vmem_to_hbm [thread:$0]  (%p3661_p5), %s2745_s5, 128, %s4156_s1, %s2727_s29   ;;  %v2709_v14 = vpop.permute.xlu0 %2708  ;;  %v2718_v15 = vand.u32 127, %v1249_v34  ;;  %vm2724_vm6 = vcmask 57344  }
 0xac1   : > { %v2714_v16 = vrot.slane %v2709_v14, %v3874_v36  ;;  %s2963_s30 = sshll.u32 %s3644_s22, 4  ;;  %s753_s3 = scalar_lea.vmem [#allocation5], %s3825_s2 }
 0xac2   : > { %v2721_v2 = vsub.s32 %v2718_v15, %v3871_v35  ;;  %s2757_s26 = sshll.u32 %s753_s3, 4  ;;  %s4292_s24 = sld [smem:[#allocation24_spill]]  ;;  %s4187_s26 = int_to_ptr.vmem [resolvable:$true] %s2757_s26 }
 0xac3   : > { %s2732_s1 = scalar_lea.sflag [#allocation6], %s3825_s2  ;;  %s3406_s5 = scalar_lea.vmem %s4187_s26, 16 }
 0xac4   : > { %p3407_p1 = scmp.ne.s32.totalorder %s4187_s26, %s3406_s5  ;;  %s3494_s22 = smov [#allocation5]  }
 0xac5   : > { %s3410_s29 = sshll.u32 %s3494_s22, 4  ;;  %s3411_s29 = int_to_ptr.vmem [resolvable:$false] %s3410_s29 }
 0xac6   : > { %p3408_p2 = pnand %p3407_p1, %p3661_p5  ;;  %s3412_s6 = scalar_lea.vmem %s3411_s29, 32 }
 0xac7   : > { %p3413_p4 = scmp.lt.s32.totalorder %s4187_s26, %s3411_s29  ;;  %p3414_p7 = scmp.lt.s32.totalorder %s3412_s6, %s3406_s5 }
 0xac8   : > { %s4185_s27 = scalar_lea.hbm %s4292_s24, %s2963_s30  ;;  %p3409_p3 = pneg %p3408_p2 }
 0xac9   : > { %p3415_p8 = por %p3414_p7, %p3413_p4 }
 0xacb   : > { %p3416_p9 = pnand %p3415_p8, %p3409_p3 }
 0xb40   : > { %v2704_v17 = vpop.xlane.xlu1 %2703 }
 0xb41   : > { %v2715_v8 = vadd.f32 %v2714_v16, %v2704_v17 }
 0xb43   : > { %v2722_v19 = vrot.slane %v2715_v8, %v2721_v2 }
 0xb45   : > { %2725 = vst.msk [vmem:[%s753_s3] sm:$0x1] %vm2724_vm6, %v2722_v19 }
 0xb46   : > { %3419 = shalt.err (!%p3416_p9)
}
 0xb47   : > { %s3420_s2 = scalar_lea.hbm %s4185_s27, 16  ;;  %s3424_s3 = scalar_lea.hbm %s4292_s24, 32 }
 0xb48   : > { %p3421_p10 = scmp.ne.s32.totalorder %s4185_s27, %s3420_s2  ;;  %p3425_p13 = scmp.lt.u32.totalorder %s4185_s27, %s4292_s24 }
 0xb49   : > { %p3426_p0 = scmp.lt.u32.totalorder %s3424_s3, %s3420_s2  ;;  %p3428_p2 = scmp.lt.u32.totalorder %s3420_s2, %s4185_s27 }
 0xb4a   : > { %p3422_p11 = pnand %p3421_p10, %p3661_p5 }
 0xb4b   : > { %p3427_p1 = por %p3426_p0, %p3425_p13 }
 0xb4c   : > { %p3423_p12 = pneg %p3422_p11 }
 0xb4d   : > { %p3429_p3 = por %p3428_p2, %p3427_p1 }
 0xb4f   : > { %p3430_p4 = pnand %p3429_p3, %p3423_p12 }
 0xb51   : > { %3433 = shalt.err (!%p3430_p4)
}
 0xb52   : > { %3191 = dma.vmem_to_hbm [thread:$0]  (%p3661_p5), %s4187_s26, 16, %s4185_s27, %s2732_s1  }
 0xb53 PF: > { %s4293_s5 = sld [smem:[#allocation11_spill]]  ;;  %s4294_s22 = sld [smem:[#allocation9_spill]] }
 0xb59   : > { %p3201_p7 = scmp.ge.s32.totalorder %s4293_s5, 2  ;;  %s2769_s6 = sand.u32 1, %s4294_s22  }
 0xb5a   : > { %s2770_s7 = scalar_lea.sflag [#allocation4], %s2769_s6 }
 0xb5b   : > { %p3195_p8 = pnand %p3201_p7, %p3665_p6 }
 0xb5d   : > { %3451 = dma.done.wait (!%p3195_p8), %s2770_s7, 128  }
 0xb5e   : > { %3453 = vsyncadd (!%p3195_p8), %s2770_s7, 4294967168  ;;  %s2779_s2 = scalar_lea.sflag [#allocation6], %s2769_s6 }
 0xb5f   : > { %3455 = dma.done.wait (!%p3195_p8), %s2779_s2, 16  }
 0xb60   : > { %3457 = vsyncadd (!%p3195_p8), %s2779_s2, 4294967280  ;;  %s4296_s2 = sld [smem:[#allocation12_spill]]  ;;  %s4297_s25 = sld [smem:[#allocation10_spill]] }
 0xb61   : > { %s4298_s6 = sld [smem:[#allocation13_spill]]  ;;  %s4299_s27 = smov %s3464_s28 }
 0xb66   : > { %p40_p5 = scmp.ge.s32.totalorder %s4296_s2, 4   ;;  %s4300_s28 = smov %s4297_s25 }
 0xb68   :  { %42 = sbr.rel (!%p40_p5) target bundleno = 16 (0x10), region = 167 }
 0xb6f   :  { %2783 = vsyncpa [#allocation4], 1 }
 0xb70   :  { %2785 = vsyncpa [#allocation4 + $0x1], 1 }
 0xb71   :  { %2786 = vsyncpa [#allocation6], 1 }
 0xb72   :  { %2788 = vsyncpa [#allocation6 + $0x1], 1 }

</bundles_post_ra>
